<compile_context>
chip_gen: v6e
topology: v6e:2x2x1
jax: 0.10.0
libtpu: 0.0.40
codegen_flags: <defaults>
</compile_context>

<pallas_src>
import functools
import math

import jax
import jax.numpy as jnp
from jax.experimental import pallas as pl
from jax.experimental.pallas import tpu as pltpu


def _round_up(x, m):
    return ((x + m - 1) // m) * m


def _vmem_budget_bytes():
    """Per-TensorCore VMEM budget (0.8x physical), with a v7x-safe fallback."""
    try:
        cap = int(pltpu.get_tpu_info().vmem_capacity_bytes)
        if cap > 0:
            return int(0.8 * cap)
    except Exception:
        pass
    return 48 * 1024 * 1024  # fits under v7x's 64 MiB/TC


def _estimate_vmem_bytes(tm, block_k, out_pad, num_k, x_isz, w_isz, o_isz,
                         separate_skip):
    est = 2 * tm * block_k * x_isz                     # double-buffered x tiles
    est += (2 if num_k > 1 else 1) * block_k * out_pad * w_isz   # weight block
    est += 8 * out_pad * 4                             # packed b/gamma/beta
    est += 2 * tm * out_pad * o_isz                    # double-buffered out tiles
    if num_k > 1:
        est += tm * out_pad * 4                        # f32 accumulator scratch
    est += 3 * tm * out_pad * 4                        # f32 epilogue temporaries
    if separate_skip:
        est += 2 * tm * out_pad * x_isz                # skip-connection x operand
    return est


def _ffn_kernel(*refs, activation, skip_connection, separate_skip_operand,
                use_layernorm, eps, out_dim, mxu_dtype, mxu_precision, num_k):
    if separate_skip_operand:
        x_ref, xs_ref, w_ref, p_ref, o_ref, *scratch = refs
    else:
        x_ref, w_ref, p_ref, o_ref, *scratch = refs
        xs_ref = None
    acc_ref = scratch[0] if scratch else None

    k = pl.program_id(1)

    x = x_ref[...]
    xm = x if x.dtype == mxu_dtype else x.astype(mxu_dtype)
    partial = jnp.dot(xm, w_ref[...], preferred_element_type=jnp.float32,
                      precision=mxu_precision)

    if num_k == 1:
        y_acc = partial
    else:
        y_acc = None

        @pl.when(k == 0)
        def _init():
            acc_ref[...] = jnp.zeros_like(acc_ref)

        acc_ref[...] += partial

    def _epilogue():
        p = p_ref[...].astype(jnp.float32)
        y = (y_acc if num_k == 1 else acc_ref[...]) + p[0:1, :]

        if activation == 'sigmoid':
            # One EUP op (tanh) instead of exp + divide.
            a = 0.5 * jnp.tanh(0.5 * y) + 0.5
        elif activation == 'relu':
            a = jnp.maximum(y, 0.0)
        elif activation == 'leakyrelu':
            a = jnp.where(y >= 0.0, y, 0.2 * y)
        elif activation == 'tanh':
            a = jnp.tanh(y)
        elif activation == 'gelu':
            a = jax.nn.gelu(y, approximate=False)
        else:
            raise ValueError(f'activation {activation} not recognized')

        # TODO(synk): dropout is inference-mode identity (dropout_rate=None in
        # the reference); training dropout would need the TPU PRNG primitives.

        if skip_connection:
            if separate_skip_operand:
                a = a + xs_ref[...].astype(jnp.float32)
            else:
                a = a + x.astype(jnp.float32)

        if use_layernorm:
            out_pad = a.shape[-1]
            padded_cols = out_pad != out_dim
            inv_d = 1.0 / float(out_dim)
            if padded_cols:
                lane = jax.lax.broadcasted_iota(jnp.int32, (1, out_pad), 1)
                col_mask = lane < out_dim
            # Padded output columns are exact zeros unless the activation maps
            # 0 to a nonzero value (only sigmoid here), so the mean mask is
            # only needed for sigmoid.
            if padded_cols and activation == 'sigmoid':
                a_sum = jnp.where(col_mask, a, 0.0)
            else:
                a_sum = a
            mean = jnp.sum(a_sum, axis=-1, keepdims=True) * inv_d
            centered = a - mean
            c = jnp.where(col_mask, centered, 0.0) if padded_cols else centered
            var = jnp.sum(c * c, axis=-1, keepdims=True) * inv_d
            a = centered * jax.lax.rsqrt(var + eps)
            a = a * p[1:2, :] + p[2:3, :]

        o_ref[...] = a.astype(o_ref.dtype)

    if num_k == 1:
        _epilogue()
    else:
        pl.when(k == num_k - 1)(_epilogue)


def single_feed_forward_nn(x, w, b, gamma, beta, *,
                           activation='sigmoid',
                           skip_connection=False,
                           use_layernorm=False,
                           eps=1e-5,
                           matmul_dtype=None):
    """x: [..., input_dim]; w: [input_dim, output_dim]; b/gamma/beta: [output_dim]."""
    in_dim = x.shape[-1]
    assert w.shape[0] == in_dim
    out_dim = w.shape[1]
    lead_shape = x.shape[:-1]
    n = int(math.prod(lead_shape)) if lead_shape else 1
    x2d = x.reshape(n, in_dim)

    in_pad = _round_up(in_dim, 128)
    out_pad = _round_up(out_dim, 128)

    # MXU feed dtype: bf16 path when either operand is bf16 (or forced).
    if matmul_dtype is not None:
        mxu_dtype = jnp.dtype(matmul_dtype)
    elif x.dtype == jnp.bfloat16 or w.dtype == jnp.bfloat16:
        mxu_dtype = jnp.dtype(jnp.bfloat16)
    else:
        mxu_dtype = jnp.dtype(x.dtype)
    mxu_precision = (jax.lax.Precision.HIGHEST
                     if mxu_dtype == jnp.dtype(jnp.float32) else None)

    # Feature (lane) axis zero-padding only when needed; rows are never padded.
    if in_pad != in_dim:
        x2d = jnp.pad(x2d, ((0, 0), (0, in_pad - in_dim)))
    w_p = w
    if (in_pad, out_pad) != (in_dim, out_dim):
        w_p = jnp.pad(w_p, ((0, in_pad - in_dim), (0, out_pad - out_dim)))
    if w_p.dtype != mxu_dtype:
        w_p = w_p.astype(mxu_dtype)

    # Pack bias / gamma / beta into a single sublane-aligned (8, out_pad) block.
    params = jnp.zeros((8, out_pad), jnp.float32)
    params = params.at[0, :out_dim].set(b.astype(jnp.float32))
    params = params.at[1, :out_dim].set(gamma.astype(jnp.float32))
    params = params.at[2, :out_dim].set(beta.astype(jnp.float32))

    # Matches the PyTorch module: skip only when dims agree.
    skip = bool(skip_connection) and (in_dim == out_dim)

    x_isz = jnp.dtype(x2d.dtype).itemsize
    w_isz = jnp.dtype(w_p.dtype).itemsize
    o_isz = jnp.dtype(x.dtype).itemsize
    packing = max(8, 32 // x_isz)        # sublane packing: f32->8, bf16->16, i8->32

    vmem_budget = _vmem_budget_bytes()

    # --- K (contraction) tiling: bound the resident weight block.
    w_block_budget = max(128 * out_pad * w_isz, int(0.4 * vmem_budget))
    if in_pad * out_pad * w_isz <= w_block_budget:
        block_k, num_k = in_pad, 1
    else:
        m = in_pad // 128
        best = 1
        for d in range(1, m + 1):
            if m % d == 0 and 128 * d * out_pad * w_isz <= w_block_budget:
                best = d
        block_k = 128 * best
        num_k = in_pad // block_k

    # With K tiling, the skip term needs the full x row block aligned to the
    # output columns (skip implies in_pad == out_pad), so pass x a second time.
    separate_skip = skip and num_k > 1

    # --- Adaptive row tile.
    row_cap = _round_up(max(n, 1), packing)
    tm = packing
    for cand in (8, 16, 32, 64, 128, 256, 512, 768, 1024):
        if cand % packing != 0:
            continue
        if _estimate_vmem_bytes(cand, block_k, out_pad, num_k, x_isz, w_isz,
                                o_isz, separate_skip) > vmem_budget:
            break
        tm = cand
        if cand >= row_cap:
            break
    tm = min(tm, row_cap)
    # Megacore (v7x has 2 TCs): keep >= 2 row-grid steps when there is work.
    while pl.cdiv(max(n, 1), tm) < 2 and tm > packing:
        tm = max(packing, _round_up(tm // 2, packing))

    grid_rows = pl.cdiv(n, tm)

    vmem_est = _estimate_vmem_bytes(tm, block_k, out_pad, num_k, x_isz, w_isz,
                                    o_isz, separate_skip)
    vmem_limit = int(min(vmem_budget, max(2 * vmem_est, 32 * 1024 * 1024)))

    kernel = functools.partial(
        _ffn_kernel,
        activation=activation,
        skip_connection=skip,
        separate_skip_operand=separate_skip,
        use_layernorm=use_layernorm,
        eps=eps,
        out_dim=out_dim,
        mxu_dtype=mxu_dtype,
        mxu_precision=mxu_precision,
        num_k=num_k,
    )

    operands = [x2d]
    if separate_skip:
        operands.append(x2d)
    operands += [w_p, params]

    scratch_shapes = []
    if num_k > 1:
        scratch_shapes.append(pltpu.VMEM((tm, out_pad), jnp.float32))

    def build_call(use_pipeline_mode):
        def spec(shape, index_map, nbuf=None):
            if use_pipeline_mode and nbuf is not None:
                return pl.BlockSpec(shape, index_map,
                                    pipeline_mode=pl.Buffered(nbuf))
            return pl.BlockSpec(shape, index_map)

        in_specs = [spec((tm, block_k), lambda i, k: (i, k))]
        if separate_skip:
            in_specs.append(spec((tm, out_pad), lambda i, k: (i, 0)))
        # Weight: stream (double-buffer) only when K is tiled; otherwise it is
        # grid-invariant -> single buffer. Params are always grid-invariant.
        in_specs.append(spec((block_k, out_pad), lambda i, k: (0, k),
                             nbuf=None if num_k > 1 else 1))
        in_specs.append(spec((8, out_pad), lambda i, k: (0, 0), nbuf=1))

        return pl.pallas_call(
            kernel,
            out_shape=jax.ShapeDtypeStruct((n, out_pad), x.dtype),
            grid_spec=pltpu.PrefetchScalarGridSpec(
                num_scalar_prefetch=0,
                grid=(grid_rows, num_k),
                in_specs=in_specs,
                out_specs=pl.BlockSpec((tm, out_pad), lambda i, k: (i, 0)),
                scratch_shapes=scratch_shapes,
            ),
            compiler_params=pltpu.CompilerParams(
                dimension_semantics=("parallel", "arbitrary"),
                vmem_limit_bytes=vmem_limit),
        )

    try:
        out2d = build_call(True)(*operands)
    except Exception:
        # Fallback for jax versions without BlockSpec(pipeline_mode=...).
        out2d = build_call(False)(*operands)

    if out_pad != out_dim:
        out2d = out2d[:, :out_dim]
    return out2d.reshape(*lead_shape, out_dim)


def init_params(key, input_dim, output_dim, dtype=jnp.float32):
    """Mirrors nn.Linear + xavier_uniform_ weight, default bias init,
    and LayerNorm (gamma=1, beta=0). Weight stored as [in, out]."""
    kw, kb = jax.random.split(key)
    limit = math.sqrt(6.0 / (input_dim + output_dim))
    w_oi = jax.random.uniform(kw, (output_dim, input_dim),
                              minval=-limit, maxval=limit, dtype=dtype)
    w = w_oi.T
    bound = 1.0 / math.sqrt(input_dim)
    b = jax.random.uniform(kb, (output_dim,), minval=-bound, maxval=bound,
                           dtype=dtype)
    gamma = jnp.ones((output_dim,), dtype=dtype)
    beta = jnp.zeros((output_dim,), dtype=dtype)
    return w, b, gamma, beta


if __name__ == "__main__":
    key = jax.random.PRNGKey(0)
    k_x, k_p, k_x2, k_p2, k_g2, k_b2 = jax.random.split(key, 6)

    # --- Test 1: equal dims, sigmoid + skip + layernorm (the module's main path).
    batch, seq, hidden = 2, 8, 32
    x = jax.random.normal(k_x, (batch, seq, hidden), dtype=jnp.float32)
    w, b, gamma, beta = init_params(k_p, hidden, hidden)

    out = single_feed_forward_nn(
        x, w, b, gamma, beta,
        activation='sigmoid', skip_connection=True, use_layernorm=True)
    out = jax.block_until_ready(out)

    y_ref = jnp.dot(x, w, precision=jax.lax.Precision.HIGHEST) + b
    a_ref = jax.nn.sigmoid(y_ref) + x
    mu = jnp.mean(a_ref, axis=-1, keepdims=True)
    var = jnp.mean((a_ref - mu) ** 2, axis=-1, keepdims=True)
    ref = (a_ref - mu) * jax.lax.rsqrt(var + 1e-5) * gamma + beta

    assert out.shape == (batch, seq, hidden)
    assert jnp.allclose(out, ref, atol=1e-3, rtol=1e-3), (
        float(jnp.max(jnp.abs(out - ref))))

    # --- Test 2: unequal dims (no skip), relu + layernorm, ragged row count.
    in2, out2 = 32, 48
    x2 = jax.random.normal(k_x2, (3, 5, in2), dtype=jnp.float32)
    w2, b2, _, _ = init_params(k_p2, in2, out2)
    gamma2 = 1.0 + 0.1 * jax.random.normal(k_g2, (out2,), dtype=jnp.float32)
    beta2 = 0.1 * jax.random.normal(k_b2, (out2,), dtype=jnp.float32)

    out_b = single_feed_forward_nn(
        x2, w2, b2, gamma2, beta2,
        activation='relu', skip_connection=True, use_layernorm=True)
    out_b = jax.block_until_ready(out_b)

    y2 = jnp.dot(x2, w2, precision=jax.lax.Precision.HIGHEST) + b2
    a2 = jnp.maximum(y2, 0.0)              # skip inactive: in_dim != out_dim
    mu2 = jnp.mean(a2, axis=-1, keepdims=True)
    var2 = jnp.mean((a2 - mu2) ** 2, axis=-1, keepdims=True)
    ref2 = (a2 - mu2) * jax.lax.rsqrt(var2 + 1e-5) * gamma2 + beta2

    assert out_b.shape == (3, 5, out2)
    assert jnp.allclose(out_b, ref2, atol=1e-3, rtol=1e-3), (
        float(jnp.max(jnp.abs(out_b - ref2))))

    print("KERNEL_OK")
</pallas_src>

<mosaic_0001>
module attributes {stable_mosaic.version = 11 : i64} {
  func.func @_ffn_kernel(%arg0: i32, %arg1: i32, %arg2: memref<8x128xf32, #tpu.memory_space<vmem>>, %arg3: memref<128x128xf32, #tpu.memory_space<vmem>>, %arg4: memref<8x128xf32, #tpu.memory_space<vmem>>, %arg5: memref<8x128xf32, #tpu.memory_space<vmem>>) attributes {dimension_semantics = [#tpu.dimension_semantics<parallel>, #tpu.dimension_semantics<arbitrary>], iteration_bounds = array<i64: 2, 1>, scalar_prefetch = 0 : i64, scratch_operands = 0 : i64, tpu.core_type = #tpu.core_type<tc>, window_params = [{transform_indices = @transform_0, window_bounds = array<i64: 8, 128>}, {pipeline_mode = #tpu.pipeline_mode<synchronous>, transform_indices = @transform_1, window_bounds = array<i64: 128, 128>}, {pipeline_mode = #tpu.pipeline_mode<synchronous>, transform_indices = @transform_2, window_bounds = array<i64: 8, 128>}, {transform_indices = @transform_3, window_bounds = array<i64: 8, 128>}]} {
    %c0 = arith.constant 0 : index
    %c0_0 = arith.constant 0 : index
    %0 = vector.load %arg2[%c0, %c0_0] : memref<8x128xf32, #tpu.memory_space<vmem>>, vector<8x128xf32>
    %c0_1 = arith.constant 0 : index
    %c0_2 = arith.constant 0 : index
    %1 = vector.load %arg3[%c0_1, %c0_2] : memref<128x128xf32, #tpu.memory_space<vmem>>, vector<128x128xf32>
    %cst = arith.constant dense<0.000000e+00> : vector<8x128xf32>
    %2 = tpu.matmul %0, %1, %cst {dimension_numbers = #tpu.dot_dimension_numbers<[1], [0], [0], [1], [0, 0, 1, 1], [], []>, precision = #tpu.contract_precision<fp32>} : vector<8x128xf32>, vector<128x128xf32>, vector<8x128xf32> -> vector<8x128xf32>
    %c0_3 = arith.constant 0 : index
    %c0_4 = arith.constant 0 : index
    %3 = vector.load %arg4[%c0_3, %c0_4] : memref<8x128xf32, #tpu.memory_space<vmem>>, vector<8x128xf32>
    %4 = vector.extract_strided_slice %3 {offsets = [0, 0], sizes = [1, 128], strides = [1, 1]} : vector<8x128xf32> to vector<1x128xf32>
    %5 = vector.broadcast %4 : vector<1x128xf32> to vector<8x128xf32>
    %6 = arith.addf %2, %5 : vector<8x128xf32>
    %cst_5 = arith.constant 5.000000e-01 : f32
    %7 = vector.broadcast %cst_5 : f32 to vector<8x128xf32>
    %8 = arith.mulf %7, %6 : vector<8x128xf32>
    %9 = math.tanh %8 : vector<8x128xf32>
    %cst_6 = arith.constant 5.000000e-01 : f32
    %10 = vector.broadcast %cst_6 : f32 to vector<8x128xf32>
    %11 = arith.mulf %10, %9 : vector<8x128xf32>
    %cst_7 = arith.constant 5.000000e-01 : f32
    %12 = vector.broadcast %cst_7 : f32 to vector<8x128xf32>
    %13 = arith.addf %11, %12 : vector<8x128xf32>
    %14 = arith.addf %13, %0 : vector<8x128xf32>
    %15 = tpu.iota {dimensions = array<i32: 1>} : vector<1x128xi32>
    %c32_i32 = arith.constant 32 : i32
    %16 = vector.broadcast %c32_i32 : i32 to vector<1x128xi32>
    %17 = arith.cmpi slt, %15, %16 : vector<1x128xi32>
    %cst_8 = arith.constant 0.000000e+00 : f32
    %18 = vector.shape_cast %17 : vector<1x128xi1> to vector<1x128xi1>
    %19 = vector.broadcast %18 : vector<1x128xi1> to vector<8x128xi1>
    %20 = vector.broadcast %cst_8 : f32 to vector<8x128xf32>
    %21 = arith.select %19, %14, %20 : vector<8x128xi1>, vector<8x128xf32>
    %cst_9 = arith.constant dense<0.000000e+00> : vector<8xf32>
    %22 = vector.multi_reduction <add>, %21, %cst_9 [1] : vector<8x128xf32> to vector<8xf32>
    %23 = vector.shape_cast %22 : vector<8xf32> to vector<8x1xf32>
    %cst_10 = arith.constant 3.125000e-02 : f32
    %24 = vector.broadcast %cst_10 : f32 to vector<8x1xf32>
    %25 = arith.mulf %23, %24 : vector<8x1xf32>
    %26 = vector.broadcast %25 : vector<8x1xf32> to vector<8x128xf32>
    %27 = arith.subf %14, %26 : vector<8x128xf32>
    %cst_11 = arith.constant 0.000000e+00 : f32
    %28 = vector.shape_cast %17 : vector<1x128xi1> to vector<1x128xi1>
    %29 = vector.broadcast %28 : vector<1x128xi1> to vector<8x128xi1>
    %30 = vector.broadcast %cst_11 : f32 to vector<8x128xf32>
    %31 = arith.select %29, %27, %30 : vector<8x128xi1>, vector<8x128xf32>
    %32 = arith.mulf %31, %31 : vector<8x128xf32>
    %cst_12 = arith.constant dense<0.000000e+00> : vector<8xf32>
    %33 = vector.multi_reduction <add>, %32, %cst_12 [1] : vector<8x128xf32> to vector<8xf32>
    %34 = vector.shape_cast %33 : vector<8xf32> to vector<8x1xf32>
    %cst_13 = arith.constant 3.125000e-02 : f32
    %35 = vector.broadcast %cst_13 : f32 to vector<8x1xf32>
    %36 = arith.mulf %34, %35 : vector<8x1xf32>
    %cst_14 = arith.constant 9.99999974E-6 : f32
    %37 = vector.broadcast %cst_14 : f32 to vector<8x1xf32>
    %38 = arith.addf %36, %37 : vector<8x1xf32>
    %39 = math.rsqrt %38 : vector<8x1xf32>
    %40 = vector.broadcast %39 : vector<8x1xf32> to vector<8x128xf32>
    %41 = arith.mulf %27, %40 : vector<8x128xf32>
    %42 = vector.extract_strided_slice %3 {offsets = [1, 0], sizes = [1, 128], strides = [1, 1]} : vector<8x128xf32> to vector<1x128xf32>
    %43 = vector.broadcast %42 : vector<1x128xf32> to vector<8x128xf32>
    %44 = arith.mulf %41, %43 : vector<8x128xf32>
    %45 = vector.extract_strided_slice %3 {offsets = [2, 0], sizes = [1, 128], strides = [1, 1]} : vector<8x128xf32> to vector<1x128xf32>
    %46 = vector.broadcast %45 : vector<1x128xf32> to vector<8x128xf32>
    %47 = arith.addf %44, %46 : vector<8x128xf32>
    %c0_15 = arith.constant 0 : index
    %c0_16 = arith.constant 0 : index
    %48 = vector.load %arg5[%c0_15, %c0_16] : memref<8x128xf32, #tpu.memory_space<vmem>>, vector<8x128xf32>
    tpu.vector_store %arg5[%c0_15, %c0_16], %47 {strides = array<i32>} : memref<8x128xf32, #tpu.memory_space<vmem>>, vector<8x128xf32>,
    return
  }
  func.func @transform_0(%arg0: i32, %arg1: i32) -> (i32, i32) {
    %c0_i32 = arith.constant 0 : i32
    return %arg0, %arg1 : i32, i32
  }
  func.func @transform_1(%arg0: i32, %arg1: i32) -> (i32, i32) {
    %c0_i32 = arith.constant 0 : i32
    %c0_i32_0 = arith.constant 0 : i32
    return %c0_i32, %arg1 : i32, i32
  }
  func.func @transform_2(%arg0: i32, %arg1: i32) -> (i32, i32) {
    %c0_i32 = arith.constant 0 : i32
    %c0_i32_0 = arith.constant 0 : i32
    %c0_i32_1 = arith.constant 0 : i32
    return %c0_i32, %c0_i32_0 : i32, i32
  }
  func.func @transform_3(%arg0: i32, %arg1: i32) -> (i32, i32) {
    %c0_i32 = arith.constant 0 : i32
    %c0_i32_0 = arith.constant 0 : i32
    return %arg0, %c0_i32 : i32, i32
  }
}

module attributes {stable_mosaic.version = 11 : i64} {
  func.func @_ffn_kernel(%arg0: i32, %arg1: i32, %arg2: memref<8x128xf32, #tpu.memory_space<vmem>>, %arg3: memref<128x128xf32, #tpu.memory_space<vmem>>, %arg4: memref<8x128xf32, #tpu.memory_space<vmem>>, %arg5: memref<8x128xf32, #tpu.memory_space<vmem>>) attributes {dimension_semantics = [#tpu.dimension_semantics<parallel>, #tpu.dimension_semantics<arbitrary>], iteration_bounds = array<i64: 2, 1>, scalar_prefetch = 0 : i64, scratch_operands = 0 : i64, tpu.core_type = #tpu.core_type<tc>, window_params = [{transform_indices = @transform_0, window_bounds = array<i64: 8, 128>}, {transform_indices = @transform_1, window_bounds = array<i64: 128, 128>}, {pipeline_mode = #tpu.pipeline_mode<synchronous>, transform_indices = @transform_2, window_bounds = array<i64: 8, 128>}, {transform_indices = @transform_3, window_bounds = array<i64: 8, 128>}]} {
    %c0 = arith.constant 0 : index
    %c0_0 = arith.constant 0 : index
    %0 = vector.load %arg2[%c0, %c0_0] : memref<8x128xf32, #tpu.memory_space<vmem>>, vector<8x128xf32>
    %c0_1 = arith.constant 0 : index
    %c0_2 = arith.constant 0 : index
    %1 = vector.load %arg3[%c0_1, %c0_2] : memref<128x128xf32, #tpu.memory_space<vmem>>, vector<128x128xf32>
    %cst = arith.constant dense<0.000000e+00> : vector<8x128xf32>
    %2 = tpu.matmul %0, %1, %cst {dimension_numbers = #tpu.dot_dimension_numbers<[1], [0], [0], [1], [0, 0, 1, 1], [], []>, precision = #tpu.contract_precision<fp32>} : vector<8x128xf32>, vector<128x128xf32>, vector<8x128xf32> -> vector<8x128xf32>
    %c0_3 = arith.constant 0 : index
    %c0_4 = arith.constant 0 : index
    %3 = vector.load %arg4[%c0_3, %c0_4] : memref<8x128xf32, #tpu.memory_space<vmem>>, vector<8x128xf32>
    %4 = vector.extract_strided_slice %3 {offsets = [0, 0], sizes = [1, 128], strides = [1, 1]} : vector<8x128xf32> to vector<1x128xf32>
    %5 = vector.broadcast %4 : vector<1x128xf32> to vector<8x128xf32>
    %6 = arith.addf %2, %5 : vector<8x128xf32>
    %cst_5 = arith.constant 5.000000e-01 : f32
    %7 = vector.broadcast %cst_5 : f32 to vector<8x128xf32>
    %8 = arith.mulf %7, %6 : vector<8x128xf32>
    %9 = math.tanh %8 : vector<8x128xf32>
    %cst_6 = arith.constant 5.000000e-01 : f32
    %10 = vector.broadcast %cst_6 : f32 to vector<8x128xf32>
    %11 = arith.mulf %10, %9 : vector<8x128xf32>
    %cst_7 = arith.constant 5.000000e-01 : f32
    %12 = vector.broadcast %cst_7 : f32 to vector<8x128xf32>
    %13 = arith.addf %11, %12 : vector<8x128xf32>
    %14 = arith.addf %13, %0 : vector<8x128xf32>
    %15 = tpu.iota {dimensions = array<i32: 1>} : vector<1x128xi32>
    %c32_i32 = arith.constant 32 : i32
    %16 = vector.broadcast %c32_i32 : i32 to vector<1x128xi32>
    %17 = arith.cmpi slt, %15, %16 : vector<1x128xi32>
    %cst_8 = arith.constant 0.000000e+00 : f32
    %18 = vector.shape_cast %17 : vector<1x128xi1> to vector<1x128xi1>
    %19 = vector.broadcast %18 : vector<1x128xi1> to vector<8x128xi1>
    %20 = vector.broadcast %cst_8 : f32 to vector<8x128xf32>
    %21 = arith.select %19, %14, %20 : vector<8x128xi1>, vector<8x128xf32>
    %cst_9 = arith.constant dense<0.000000e+00> : vector<8xf32>
    %22 = vector.multi_reduction <add>, %21, %cst_9 [1] : vector<8x128xf32> to vector<8xf32>
    %23 = vector.shape_cast %22 : vector<8xf32> to vector<8x1xf32>
    %cst_10 = arith.constant 3.125000e-02 : f32
    %24 = vector.broadcast %cst_10 : f32 to vector<8x1xf32>
    %25 = arith.mulf %23, %24 : vector<8x1xf32>
    %26 = vector.broadcast %25 : vector<8x1xf32> to vector<8x128xf32>
    %27 = arith.subf %14, %26 : vector<8x128xf32>
    %cst_11 = arith.constant 0.000000e+00 : f32
    %28 = vector.shape_cast %17 : vector<1x128xi1> to vector<1x128xi1>
    %29 = vector.broadcast %28 : vector<1x128xi1> to vector<8x128xi1>
    %30 = vector.broadcast %cst_11 : f32 to vector<8x128xf32>
    %31 = arith.select %29, %27, %30 : vector<8x128xi1>, vector<8x128xf32>
    %32 = arith.mulf %31, %31 : vector<8x128xf32>
    %cst_12 = arith.constant dense<0.000000e+00> : vector<8xf32>
    %33 = vector.multi_reduction <add>, %32, %cst_12 [1] : vector<8x128xf32> to vector<8xf32>
    %34 = vector.shape_cast %33 : vector<8xf32> to vector<8x1xf32>
    %cst_13 = arith.constant 3.125000e-02 : f32
    %35 = vector.broadcast %cst_13 : f32 to vector<8x1xf32>
    %36 = arith.mulf %34, %35 : vector<8x1xf32>
    %cst_14 = arith.constant 9.99999974E-6 : f32
    %37 = vector.broadcast %cst_14 : f32 to vector<8x1xf32>
    %38 = arith.addf %36, %37 : vector<8x1xf32>
    %39 = math.rsqrt %38 : vector<8x1xf32>
    %40 = vector.broadcast %39 : vector<8x1xf32> to vector<8x128xf32>
    %41 = arith.mulf %27, %40 : vector<8x128xf32>
    %42 = vector.extract_strided_slice %3 {offsets = [1, 0], sizes = [1, 128], strides = [1, 1]} : vector<8x128xf32> to vector<1x128xf32>
    %43 = vector.broadcast %42 : vector<1x128xf32> to vector<8x128xf32>
    %44 = arith.mulf %41, %43 : vector<8x128xf32>
    %45 = vector.extract_strided_slice %3 {offsets = [2, 0], sizes = [1, 128], strides = [1, 1]} : vector<8x128xf32> to vector<1x128xf32>
    %46 = vector.broadcast %45 : vector<1x128xf32> to vector<8x128xf32>
    %47 = arith.addf %44, %46 : vector<8x128xf32>
    %c0_15 = arith.constant 0 : index
    %c0_16 = arith.constant 0 : index
    %48 = vector.load %arg5[%c0_15, %c0_16] : memref<8x128xf32, #tpu.memory_space<vmem>>, vector<8x128xf32>
    tpu.vector_store %arg5[%c0_15, %c0_16], %47 {strides = array<i32>} : memref<8x128xf32, #tpu.memory_space<vmem>>, vector<8x128xf32>,
    return
  }
  func.func @transform_0(%arg0: i32, %arg1: i32) -> (i32, i32) {
    %c0_i32 = arith.constant 0 : i32
    return %arg0, %arg1 : i32, i32
  }
  func.func @transform_1(%arg0: i32, %arg1: i32) -> (i32, i32) {
    %c0_i32 = arith.constant 0 : i32
    %c0_i32_0 = arith.constant 0 : i32
    return %c0_i32, %arg1 : i32, i32
  }
  func.func @transform_2(%arg0: i32, %arg1: i32) -> (i32, i32) {
    %c0_i32 = arith.constant 0 : i32
    %c0_i32_0 = arith.constant 0 : i32
    %c0_i32_1 = arith.constant 0 : i32
    return %c0_i32, %c0_i32_0 : i32, i32
  }
  func.func @transform_3(%arg0: i32, %arg1: i32) -> (i32, i32) {
    %c0_i32 = arith.constant 0 : i32
    %c0_i32_0 = arith.constant 0 : i32
    return %arg0, %c0_i32 : i32, i32
  }
}

</mosaic_0001>

<bundles_post_ra>
// kernel: tpu_custom_call.1
= control target key start
LH: loop header
LB: loop body
LE: loop exit
PB: predicated region body
PF: predicated region fallthrough
CT: control target
= control target key end

     0   :  { %8 = vsyncpa [#allocation3], 0  ;;  %s2209_s0 = inlined_call_operand.hbm [shape: f32[16,128], index: 0, kind: input, shape index: {}]   ;;  %s2210_s1 = inlined_call_operand.hbm [shape: f32[128,128], index: 1, kind: input, shape index: {}]   ;;  %s2211_s2 = inlined_call_operand.hbm [shape: f32[8,128], index: 2, kind: input, shape index: {}]   ;;  %s2212_s3 = inlined_call_operand.hbm [shape: f32[16,128], index: 3, kind: output, shape index: {}]  }
   0x1   :  { %10 = vsyncpa [#allocation3 + $0x1], 0 }
   0x2   :  { %11 = vsyncpa [#allocation6], 0 }
   0x3   :  { %12 = vsyncpa [#allocation4], 0 }
   0x4   :  { %14 = vsyncpa [#allocation4 + $0x1], 0  ;;  %s1660_s12 = smov 0   ;;  %s1662_s13 = smov 0  }
   0x5   :  { %s1664_s14 = smov 0   ;;  %s1666_s15 = smov 0  }
   0x6   :  { %s1668_s16 = smov 0   ;;  %s1670_s17 = smov 0  }
   0x7 LB: > { %s1046_s18 = sadd.s32 4294967295, %s1630_s17   ;;  %s1047_s19 = sadd.s32 4294967294, %s1630_s17   ;;  %s1630_s17 = sphi %s1670_s17, %s20_s17   ;;  %s1626_s16 = sphi %s1668_s16, %s2232_s16   ;;  %s1622_s15 = sphi %s1666_s15, %s2231_s15   ;;  %s1618_s14 = sphi %s1664_s14, %s2230_s14   ;;  %s1614_s13 = sphi %s1662_s13, %s2229_s13   ;;  %s1610_s12 = sphi %s1660_s12, %s2228_s12  }
   0x8   : > { %p54_p0 = scmp.ne.s32.totalorder %s1614_s13, %s1610_s12  ;;  %p1694_p1 = scmp.eq.s32.totalorder %s1046_s18, 0 }
   0x9   : > { %p1698_p2 = scmp.eq.s32.totalorder %s1046_s18, 1  ;;  %p131_p3 = scmp.eq.s32.totalorder %s1047_s19, 1 }
   0xa   : > { %s2216_s20 = scalar_select %p1694_p1, 1, 0 }
   0xb   : > { %p1704_p4 = por %p1694_p1, %p54_p0  ;;  %p1048_p5 = scmp.ge.s32.totalorder %s1630_s17, 1 }
   0xc   : > { %p1709_p6 = por %p131_p3, %p54_p0  ;;  %p138_p7 = scmp.lt.s32.totalorder %s1630_s17, 3 }
   0xd   : > { %s2218_s22 = scalar_select %p1704_p4, 1, 0 }
   0xe   : > { %s2219_s23 = scalar_select %p1709_p6, 1, 0 }
   0xf   : > { %p1714_p8 = pnand %p1048_p5, %p138_p7  ;;  %s1632_s25 = smov [#allocation5]  }
  0x10   : > { %s152_s26 = sshll.u32 %s1632_s25, 4  ;;  %s1633_s28 = smov [#allocation7]   ;;  %s153_s26 = int_to_ptr.vmem [resolvable:$true] %s152_s26 }
  0x11   : > { %p1387_p9 = pneg %p1714_p8  ;;  %s166_s29 = sshll.u32 %s1633_s28, 4  ;;  %s167_s29 = int_to_ptr.vmem [resolvable:$true] %s166_s29 }
  0x12   : > { %s1477_s30 = scalar_lea.vmem %s153_s26, 2048  ;;  %p1485_p5 = scmp.lt.s32.totalorder %s153_s26, %s153_s26 }
  0x13   : > { %p1723_p11 = pnand %p1387_p9, %p1694_p1  ;;  %p1478_p13 = scmp.ne.s32.totalorder %s153_s26, %s1477_s30 }
  0x14   : > { %p1486_p7 = scmp.lt.s32.totalorder %s1477_s30, %s1477_s30 }
  0x15   : > { %p1468_p12 = pneg %p1723_p11 }
  0x16   : > { %p1487_p10 = por %p1486_p7, %p1485_p5 }
  0x17   : > { %p1480_p0 = pnand %p1478_p13, %p1468_p12 }
  0x19   : > { %p1481_p3 = pneg %p1480_p0 }
  0x1b   : > { %p1488_p9 = pnand %p1487_p10, %p1481_p3 }
  0x1d   : > { %1491 = shalt.err (!%p1488_p9)
}
  0x1e   : > { %s1634_s4 = smov 128   ;;  %s1635_s5 = smov 8  }
  0x1f   : > { %1390 = dma.hbm_to_vmem [thread:$0]  (!%p1723_p11), %s2210_s1, 2048, %s153_s26, [#allocation6], %s1634_s4, %s1634_s4, %s1635_s5  }
  0x20   : > { %s1503_s8 = scalar_lea.vmem %s167_s29, 128  ;;  %p1511_p1 = scmp.lt.s32.totalorder %s167_s29, %s167_s29 }
  0x21   : > { %p1504_p6 = scmp.ne.s32.totalorder %s167_s29, %s1503_s8  ;;  %p1512_p4 = scmp.lt.s32.totalorder %s1503_s8, %s1503_s8 }
  0x23   : > { %p1506_p13 = pnand %p1504_p6, %p1468_p12  ;;  %p1513_p5 = por %p1512_p4, %p1511_p1 }
  0x25   : > { %p1507_p0 = pneg %p1506_p13 }
  0x27   : > { %p1514_p10 = pnand %p1513_p5, %p1507_p0 }
  0x29   : > { %1517 = shalt.err (!%p1514_p10)
}
  0x2a   : > { %1393 = dma.hbm_to_vmem [thread:$0]  (!%p1723_p11), %s2211_s2, 128, %s167_s29, [#allocation6]  }
  0x2b   : > { %s32_s11 = sadd.s32 1, %s1626_s16  ;;  %s41_s18 = sadd.s32 1, %s1618_s14 }
  0x2c   : > { %p34_p1 = scmp.ge.s32.totalorder %s32_s11, 2  ;;  %p48_p4 = scmp.ne.s32.totalorder %s1618_s14, %s1614_s13 }
  0x2d   : > { %p49_p6 = scmp.eq.s32.totalorder %s1630_s17, 0  ;;  %p1404_p12 = scmp.lt.s32.totalorder %s1630_s17, 2 }
  0x2e   : > { %s2234_s11 = smov (%p34_p1, %s32_s11), 0  ;;  %p1755_p7 = por %p1698_p2, %p48_p4 }
  0x2f   : > { %p50_p3 = por %p49_p6, %p48_p4  ;;  %s36_s25 = ssub.s32 %s1626_s16, %s2234_s11 }
  0x30   : > { %s177_s26 = sand.u32 1, %s1618_s14   ;;  %p39_p9 = scmp.eq.s32.totalorder %s36_s25, 0 }
  0x31   : > { %s1052_s27 = sshll.u32 %s177_s26, 3  ;;  %s1053_s28 = sshll.u32 %s1626_s16, 7 }
  0x32   : > { %s1764_s29 = scalar_select %p39_p9, %s1618_s14, %s41_s18  }
  0x33   : > { %s187_s5 = scalar_lea.hbm %s2209_s0, %s1053_s28  ;;  %s181_s6 = scalar_lea.vmem [#allocation2], %s1052_s27 }
  0x34   : > { %s189_s7 = sshll.u32 %s181_s6, 4  ;;  %p1771_p11 = pnand %p1404_p12, %p50_p3  ;;  %s190_s7 = int_to_ptr.vmem [resolvable:$true] %s189_s7 }
  0x35   : > { %s178_s8 = scalar_lea.sflag [#allocation3], %s177_s26  ;;  %s1531_s9 = scalar_lea.vmem %s190_s7, 128 }
  0x36   : > { %p1520_p2 = pneg %p1771_p11  ;;  %p1532_p13 = scmp.ne.s32.totalorder %s190_s7, %s1531_s9 }
  0x37   : > { %s1636_s10 = smov [#allocation2]  }
  0x38   : > { %p1534_p0 = pnand %p1532_p13, %p1520_p2  ;;  %s1536_s18 = sshll.u32 %s1636_s10, 4  ;;  %s1537_s18 = int_to_ptr.vmem [resolvable:$false] %s1536_s18 }
  0x39   : > { %s1538_s25 = scalar_lea.vmem %s1537_s18, 256  ;;  %p1539_p10 = scmp.lt.s32.totalorder %s190_s7, %s1537_s18 }
  0x3a   : > { %p1535_p5 = pneg %p1534_p0  ;;  %p1540_p1 = scmp.lt.s32.totalorder %s1538_s25, %s1531_s9 }
  0x3c   : > { %p1541_p4 = por %p1540_p1, %p1539_p10 }
  0x3e   : > { %p1542_p6 = pnand %p1541_p4, %p1535_p5 }
  0x40   : > { %1545 = shalt.err (!%p1542_p6)
}
  0x41   : > { %1397 = dma.hbm_to_vmem [thread:$0]  (!%p1771_p11), %s187_s5, 128, %s190_s7, %s178_s8  }
  0x42   : > { %198 = sbr.rel (%p1714_p8) target bundleno = 723 (0x2d3), region = 32  ;;  %s1782_s26 = sand.u32 (!%p1714_p8), 1, %s1614_s13  }
  0x43   : > { %s1055_s27 = sshll.u32 (!%p1714_p8), %s1782_s26, 3  ;;  %s201_s28 = scalar_lea.sflag (!%p1714_p8), [#allocation3], %s1782_s26 }
  0x44   : > { %s1788_s30 = scalar_lea.vmem (!%p1714_p8), [#allocation2], %s1055_s27  ;;  %p2224_p12 = scmp.ne.s32.totalorder (!%p1714_p8), %s2218_s22, 0 }
  0x47   : > { %1597 = dma.done.wait (%p2224_p12), %s201_s28, 128  }
  0x48   : > { %1599 = vsyncadd (%p2224_p12), %s201_s28, 4294967168  ;;  %p2225_p3 = scmp.ne.s32.totalorder %s2216_s20, 0 }
  0x4a   : > { %1601 = dma.done.wait (%p2225_p3), [#allocation6], 2176  }
  0x4b   : > { %1603 = vsyncadd (%p2225_p3), [#allocation6], 4294965120  ;;  %v1637_v0 = vmov 0.0   ;;  %vm1638_vm0 = vmmov 0   ;;  %v251_v1 = vld [vmem:[#allocation5 + $0x78] sm:$0xff]  ;;  %v250_v2 = vld [vmem:[#allocation5 + $0x70] sm:$0xff] }
  0x4c   : > { %1165 = vmatprep.subr.mxu0 %v1637_v0  ;;  %1200 = vmatprep.subr.mxu1 %v1637_v0  ;;  %v249_v3 = vld [vmem:[#allocation5 + $0x68] sm:$0xff]  ;;  %v1804_v4 = vand.u32 4294901760, %v251_v1  ;;  %v1806_v5 = vand.u32 4294901760, %v250_v2  ;;  %v248_v7 = vld [vmem:[#allocation5 + $0x60] sm:$0xff]  ;;  %v247_v8 = vld [vmem:[#allocation5 + $0x58] sm:$0xff]  ;;  %s1060_s20 = sshll.u32 %s1622_s15, 7 }
  0x4d   : > { %1197 = vmatprep.mubr.msk.f32.mxu0 %vm1638_vm0, %v1637_v0  ;;  %1232 = vmatprep.mubr.msk.f32.mxu1 %vm1638_vm0, %v1637_v0  ;;  %v1808_v6 = vand.u32 4294901760, %v249_v3  ;;  %v246_v9 = vld [vmem:[#allocation5 + $0x50] sm:$0xff]  ;;  %v1810_v10 = vand.u32 4294901760, %v248_v7  ;;  %v1812_v11 = vand.u32 4294901760, %v247_v8  ;;  %v245_v13 = vld [vmem:[#allocation5 + $0x48] sm:$0xff]  ;;  %v244_v14 = vld [vmem:[#allocation5 + $0x40] sm:$0xff]  ;;  %s944_s6 = scalar_lea.hbm %s2212_s3, %s1060_s20 }
  0x4e   : > { %v1814_v12 = vand.u32 4294901760, %v246_v9  ;;  %1166 = vmatpush3.msra.mxu0 %v1804_v4  ;;  %v1818_v15 = vsub.f32 %v251_v1, %v1804_v4  ;;  %v1821_v16 = vsub.f32 %v250_v2, %v1806_v5  ;;  %v1823_v17 = vand.u32 4294901760, %v245_v13  ;;  %v243_v19 = vld [vmem:[#allocation5 + $0x38] sm:$0xff]  ;;  %v242_v26 = vld [vmem:[#allocation5 + $0x30] sm:$0xff]  ;;  %v241_v36 = vld [vmem:[#allocation5 + $0x28] sm:$0xff]  ;;  %s234_s22 = scalar_lea.vmem [#allocation8], %s1055_s27 }
  0x4f   : > { %v1826_v18 = vsub.f32 %v249_v3, %v1808_v6  ;;  %1167 = vmatprep.subr.mxu0 %v1637_v0  ;;  %v1830_v20 = vsub.f32 %v248_v7, %v1810_v10  ;;  %v1833_v21 = vsub.f32 %v247_v8, %v1812_v11  ;;  %v1839_v25 = vand.u32 4294901760, %v244_v14  ;;  %v240_v41 = vld [vmem:[#allocation5 + $0x20] sm:$0xff]  ;;  %v239_v49 = vld [vmem:[#allocation5 + $0x18] sm:$0xff]  ;;  %v238_v54 = vld [vmem:[#allocation5 + $0x10] sm:$0xff]  ;;  %s946_s24 = sshll.u32 %s234_s22, 4  ;;  %s933_s7 = scalar_lea.sflag [#allocation4], %s1782_s26  ;;  %s947_s24 = int_to_ptr.vmem [resolvable:$true] %s946_s24 }
  0x50   : > { %1168 = vmatpush3.msra.mxu0 %v1806_v5  ;;  %v351_v22 = vand.u32 4294901760, %v1818_v15  ;;  %v358_v23 = vand.u32 4294901760, %v1821_v16  ;;  %v1843_v28 = vand.u32 4294901760, %v243_v19  ;;  %v1847_v30 = vsub.f32 %v246_v9, %v1814_v12  ;;  %v1889_v50 = vld [vmem:[%s1788_s30] sm:$0xff]  ;;  %v237_v60 = vld [vmem:[#allocation5 + $0x8] sm:$0xff]  ;;  %v236_v7 = vld [vmem:[#allocation5] sm:$0xff] }
  0x51   : > { %v365_v24 = vand.u32 4294901760, %v1826_v18  ;;  %1169 = vmatprep.subr.mxu0 %v1637_v0  ;;  %v372_v27 = vand.u32 4294901760, %v1830_v20  ;;  %v379_v29 = vand.u32 4294901760, %v1833_v21  ;;  %v1860_v34 = vsub.f32 %v245_v13, %v1823_v17  ;;  %s1546_s21 = scalar_lea.vmem %s947_s24, 128  ;;  %s1639_s8 = smov [#allocation8]  }
  0x52   : > { %1170 = vmatpush3.msra.mxu0 %v1808_v6  ;;  %v352_v31 = vsub.f32 %v1818_v15, %v351_v22  ;;  %v359_v32 = vsub.f32 %v1821_v16, %v358_v23  ;;  %v1863_v35 = vand.u32 4294901760, %v242_v26  ;;  %v386_v40 = vand.u32 4294901760, %v1847_v30  ;;  %p1547_p8 = scmp.ne.s32.totalorder %s947_s24, %s1546_s21  ;;  %s1550_s9 = sshll.u32 %s1639_s8, 4  ;;  %s1551_s9 = int_to_ptr.vmem [resolvable:$false] %s1550_s9 }
  0x53   : > { %v366_v33 = vsub.f32 %v1826_v18, %v365_v24  ;;  %1171 = vmatprep.subr.mxu0 %v1637_v0  ;;  %v373_v39 = vsub.f32 %v1830_v20, %v372_v27  ;;  %v380_v42 = vsub.f32 %v1833_v21, %v379_v29  ;;  %v1875_v43 = vsub.f32 %v244_v14, %v1839_v25  ;;  %s1552_s15 = scalar_lea.vmem %s1551_s9, 256  ;;  %p1553_p2 = scmp.lt.s32.totalorder %s947_s24, %s1551_s9 }
  0x54   : > { %1172 = vmatpush3.msra.mxu0 %v1810_v10  ;;  %v353_v37 = vand.u32 4294901760, %v352_v31  ;;  %v360_v38 = vand.u32 4294901760, %v359_v32  ;;  %v1878_v45 = vand.u32 4294901760, %v241_v36  ;;  %v393_v46 = vand.u32 4294901760, %v1860_v34  ;;  %p1548_p9 = pnand %p1547_p8, %p1755_p7  ;;  %p1554_p13 = scmp.lt.s32.totalorder %s1552_s15, %s1546_s21 }
  0x55   : > { %1173 = vmatprep.subr.mxu0 %v1637_v0  ;;  %v367_v44 = vand.u32 4294901760, %v366_v33  ;;  %v1882_v47 = vsub.f32 %v243_v19, %v1843_v28  ;;  %v1886_v48 = vand.u32 4294901760, %v240_v41  ;;  %v374_v51 = vand.u32 4294901760, %v373_v39 }
  0x56   : > { %1174 = vmatpush3.msra.mxu0 %v1812_v11  ;;  %1201 = vmatpush3.msra.mxu1 %v353_v37  ;;  %v387_v52 = vsub.f32 %v1847_v30, %v386_v40  ;;  %v400_v53 = vand.u32 4294901760, %v1875_v43  ;;  %v1897_v55 = vsub.f32 %v242_v26, %v1863_v35  ;;  %v381_v56 = vand.u32 4294901760, %v380_v42  ;;  %p1549_p11 = pneg %p1548_p9  ;;  %p1555_p0 = por %p1554_p13, %p1553_p2 }
  0x57   : > { %1175 = vmatprep.subr.mxu0 %v1637_v0  ;;  %1202 = vmatprep.subr.mxu1 %v1637_v0  ;;  %v407_v57 = vand.u32 4294901760, %v1882_v47  ;;  %v394_v58 = vsub.f32 %v1860_v34, %v393_v46  ;;  %v1906_v59 = vand.u32 4294901760, %v239_v49  ;;  %v1909_v61 = vsub.f32 %v241_v36, %v1878_v45 }
  0x58   : > { %1176 = vmatpush3.msra.mxu0 %v1814_v12  ;;  %1203 = vmatpush3.msra.mxu1 %v360_v38  ;;  %v1912_v62 = vand.u32 4294901760, %v1889_v50  ;;  %v1916_v63 = vand.u32 4294901760, %v238_v54  ;;  %v388_v1 = vand.u32 4294901760, %v387_v52  ;;  %v401_v2 = vsub.f32 %v1875_v43, %v400_v53  ;;  %p1556_p5 = pnand %p1555_p0, %p1549_p11 }
  0x59   : > { %1177 = vmatprep.subr.mxu0 %v1637_v0  ;;  %1204 = vmatprep.subr.mxu1 %v1637_v0  ;;  %v414_v3 = vand.u32 4294901760, %v1897_v55  ;;  %v1924_v8 = vsub.f32 %v240_v41, %v1886_v48  ;;  %v408_v9 = vsub.f32 %v1882_v47, %v407_v57  ;;  %v1931_v13 = vand.u32 4294901760, %v237_v60 }
  0x5a   : > { %1178 = vmatpush3.msra.mxu0 %v1823_v17  ;;  %1205 = vmatpush3.msra.mxu1 %v367_v44  ;;  %v395_v14 = vand.u32 4294901760, %v394_v58  ;;  %v421_v19 = vand.u32 4294901760, %v1909_v61  ;;  %v1937_v26 = vsub.f32 %v1889_v50, %v1912_v62  ;;  %v1940_v31 = vsub.f32 %v239_v49, %v1906_v59 }
  0x5b   : > { %1179 = vmatprep.subr.mxu0 %v1637_v0  ;;  %1206 = vmatprep.subr.mxu1 %v1637_v0  ;;  %v1944_v32 = vand.u32 4294901760, %v236_v7  ;;  %v402_v33 = vand.u32 4294901760, %v401_v2  ;;  %v415_v36 = vsub.f32 %v1897_v55, %v414_v3  ;;  %v428_v37 = vand.u32 4294901760, %v1924_v8 }
  0x5c   : > { %1180 = vmatpush3.msra.mxu0 %v1839_v25  ;;  %1207 = vmatpush3.msra.mxu1 %v374_v51  ;;  %v1952_v38 = vsub.f32 %v238_v54, %v1916_v63  ;;  %v409_v39 = vand.u32 4294901760, %v408_v9  ;;  %v422_v41 = vsub.f32 %v1909_v61, %v421_v19  ;;  %v340_v42 = vand.u32 4294901760, %v1937_v26 }
  0x5d   : > { %1181 = vmatprep.subr.mxu0 %v1637_v0  ;;  %1208 = vmatprep.subr.mxu1 %v1637_v0  ;;  %v435_v44 = vand.u32 4294901760, %v1940_v31  ;;  %v1963_v49 = vsub.f32 %v237_v60, %v1931_v13  ;;  %v416_v51 = vand.u32 4294901760, %v415_v36  ;;  %v429_v52 = vsub.f32 %v1924_v8, %v428_v37 }
  0x5e   : > { %1182 = vmatpush3.msra.mxu0 %v1843_v28  ;;  %1209 = vmatpush3.msra.mxu1 %v381_v56  ;;  %v442_v54 = vand.u32 4294901760, %v1952_v38  ;;  %v1973_v56 = vsub.f32 %v236_v7, %v1944_v32  ;;  %v423_v58 = vand.u32 4294901760, %v422_v41  ;;  %v341_v60 = vsub.f32 %v1937_v26, %v340_v42 }
  0x5f   : > { %1183 = vmatprep.subr.mxu0 %v1637_v0  ;;  %1210 = vmatprep.subr.mxu1 %v1637_v0  ;;  %v449_v2 = vand.u32 4294901760, %v1963_v49  ;;  %v430_v7 = vand.u32 4294901760, %v429_v52 }
  0x60   : > { %1184 = vmatpush3.msra.mxu0 %v1863_v35  ;;  %1211 = vmatpush3.msra.mxu1 %v388_v1  ;;  %v436_v1 = vsub.f32 %v1940_v31, %v435_v44  ;;  %v443_v9 = vsub.f32 %v1952_v38, %v442_v54 }
  0x61   : > { %1185 = vmatprep.subr.mxu0 %v1637_v0  ;;  %1212 = vmatprep.subr.mxu1 %v1637_v0 }
  0x62   : > { %1186 = vmatpush3.msra.mxu0 %v1878_v45  ;;  %1213 = vmatpush3.msra.mxu1 %v395_v14  ;;  %v456_v14 = vand.u32 4294901760, %v1973_v56  ;;  %v437_v36 = vand.u32 4294901760, %v436_v1  ;;  %v444_v41 = vand.u32 4294901760, %v443_v9 }
  0x63   : > { %1187 = vmatprep.subr.mxu0 %v1637_v0  ;;  %1214 = vmatprep.subr.mxu1 %v1637_v0 }
  0x64   : > { %1188 = vmatpush3.msra.mxu0 %v1886_v48  ;;  %1215 = vmatpush3.msra.mxu1 %v402_v33  ;;  %v342_v33 = vand.u32 4294901760, %v341_v60 }
  0x65   : > { %1189 = vmatprep.subr.mxu0 %v1637_v0  ;;  %1216 = vmatprep.subr.mxu1 %v1637_v0 }
  0x66   : > { %1190 = vmatpush3.msra.mxu0 %v1906_v59  ;;  %1217 = vmatpush3.msra.mxu1 %v409_v39  ;;  %v450_v39 = vsub.f32 %v1963_v49, %v449_v2 }
  0x67   : > { %1191 = vmatprep.subr.mxu0 %v1637_v0  ;;  %1218 = vmatprep.subr.mxu1 %v1637_v0 }
  0x68   : > { %1192 = vmatpush3.msra.mxu0 %v1916_v63  ;;  %1219 = vmatpush3.msra.mxu1 %v416_v51  ;;  %v457_v51 = vsub.f32 %v1973_v56, %v456_v14  ;;  %v451_v52 = vand.u32 4294901760, %v450_v39 }
  0x69   : > { %1193 = vmatprep.subr.mxu0 %v1637_v0  ;;  %1220 = vmatprep.subr.mxu1 %v1637_v0 }
  0x6a   : > { %1194 = vmatpush3.msra.mxu0 %v1931_v13  ;;  %1221 = vmatpush3.msra.mxu1 %v423_v58  ;;  %v458_v58 = vand.u32 4294901760, %v457_v51 }
  0x6b   : > { %1195 = vmatprep.subr.mxu0 %v1637_v0  ;;  %1222 = vmatprep.subr.mxu1 %v1637_v0 }
  0x6c   : > { %1196 = vmatpush3.msra.mxu0 %v1944_v32  ;;  %1223 = vmatpush3.msra.mxu1 %v430_v7 }
  0x6d   : > { %1224 = vmatprep.subr.mxu1 %v1637_v0  ;;  %1235 = vmatprep.subr.mxu0 %v1637_v0 }
  0x6e   : > { %1198 = vmatmul.mubr.f32.vlgmr.msra.gmra.mxu0 %v342_v33  ;;  %1225 = vmatpush3.msra.mxu1 %v437_v36 }
  0x6f   : > { %1236 = vmatpush3.msra.mxu0 %v1818_v15  ;;  %1226 = vmatprep.subr.mxu1 %v1637_v0 }
  0x70   : > { %1237 = vmatprep.subr.mxu0 %v1637_v0  ;;  %1227 = vmatpush3.msra.mxu1 %v444_v41 }
  0x71   : > { %1238 = vmatpush3.msra.mxu0 %v1821_v16  ;;  %1228 = vmatprep.subr.mxu1 %v1637_v0 }
  0x72   : > { %1239 = vmatprep.subr.mxu0 %v1637_v0  ;;  %1229 = vmatpush3.msra.mxu1 %v451_v52 }
  0x73   : > { %1240 = vmatpush3.msra.mxu0 %v1826_v18  ;;  %1230 = vmatprep.subr.mxu1 %v1637_v0 }
  0x74   : > { %1241 = vmatprep.subr.mxu0 %v1637_v0  ;;  %1231 = vmatpush3.msra.mxu1 %v458_v58 }
  0x75   : > { %1242 = vmatpush3.msra.mxu0 %v1830_v20  ;;  %1233 = vmatmul.mubr.f32.vlgmr.msra.gmra.mxu1 %v1912_v62 }
  0x76   : > { %1243 = vmatprep.subr.mxu0 %v1637_v0  ;;  %1270 = vmatprep.subr.mxu1 %v1637_v0 }
  0x77   : > { %1244 = vmatpush3.msra.mxu0 %v1833_v21  ;;  %1271 = vmatpush3.msra.mxu1 %v1804_v4  ;;  %v252_v21 = vld [vmem:[#allocation7] sm:$0xff] }
  0x78   : > { %1245 = vmatprep.subr.mxu0 %v1637_v0  ;;  %1272 = vmatprep.subr.mxu1 %v1637_v0 }
  0x79   : > { %1246 = vmatpush3.msra.mxu0 %v1847_v30  ;;  %1273 = vmatpush3.msra.mxu1 %v1806_v5 }
  0x7a   : > { %1247 = vmatprep.subr.mxu0 %v1637_v0  ;;  %1274 = vmatprep.subr.mxu1 %v1637_v0 }
  0x7b   : > { %1248 = vmatpush3.msra.mxu0 %v1860_v34  ;;  %1275 = vmatpush3.msra.mxu1 %v1808_v6 }
  0x7c   : > { %1249 = vmatprep.subr.mxu0 %v1637_v0  ;;  %1276 = vmatprep.subr.mxu1 %v1637_v0 }
  0x7d   : > { %1250 = vmatpush3.msra.mxu0 %v1875_v43  ;;  %1277 = vmatpush3.msra.mxu1 %v1810_v10 }
  0x7e   : > { %1251 = vmatprep.subr.mxu0 %v1637_v0  ;;  %1278 = vmatprep.subr.mxu1 %v1637_v0 }
  0x7f   : > { %1252 = vmatpush3.msra.mxu0 %v1882_v47  ;;  %1279 = vmatpush3.msra.mxu1 %v1812_v11 }
  0x80   : > { %1253 = vmatprep.subr.mxu0 %v1637_v0  ;;  %1280 = vmatprep.subr.mxu1 %v1637_v0 }
  0x81   : > { %1254 = vmatpush3.msra.mxu0 %v1897_v55  ;;  %1281 = vmatpush3.msra.mxu1 %v1814_v12 }
  0x82   : > { %1255 = vmatprep.subr.mxu0 %v1637_v0  ;;  %1282 = vmatprep.subr.mxu1 %v1637_v0 }
  0x83   : > { %1256 = vmatpush3.msra.mxu0 %v1909_v61  ;;  %1283 = vmatpush3.msra.mxu1 %v1823_v17 }
  0x84   : > { %1257 = vmatprep.subr.mxu0 %v1637_v0  ;;  %1284 = vmatprep.subr.mxu1 %v1637_v0 }
  0x85   : > { %1258 = vmatpush3.msra.mxu0 %v1924_v8  ;;  %1285 = vmatpush3.msra.mxu1 %v1839_v25 }
  0x86   : > { %1259 = vmatprep.subr.mxu0 %v1637_v0  ;;  %1286 = vmatprep.subr.mxu1 %v1637_v0 }
  0x87   : > { %1260 = vmatpush3.msra.mxu0 %v1940_v31  ;;  %1287 = vmatpush3.msra.mxu1 %v1843_v28 }
  0x88   : > { %1261 = vmatprep.subr.mxu0 %v1637_v0  ;;  %1288 = vmatprep.subr.mxu1 %v1637_v0 }
  0x89   : > { %1262 = vmatpush3.msra.mxu0 %v1952_v38  ;;  %1289 = vmatpush3.msra.mxu1 %v1863_v35 }
  0x8a   : > { %1263 = vmatprep.subr.mxu0 %v1637_v0  ;;  %1290 = vmatprep.subr.mxu1 %v1637_v0 }
  0x8b   : > { %1264 = vmatpush3.msra.mxu0 %v1963_v49  ;;  %1291 = vmatpush3.msra.mxu1 %v1878_v45 }
  0x8c   : > { %1265 = vmatprep.subr.mxu0 %v1637_v0  ;;  %1292 = vmatprep.subr.mxu1 %v1637_v0 }
  0x8d   : > { %1266 = vmatpush3.msra.mxu0 %v1973_v56  ;;  %1267 = vmatprep.mubr.msk.f32.mxu0 %vm1638_vm0, %v1637_v0 }
  0x8e   : > { %1293 = vmatpush3.msra.mxu1 %v1886_v48  ;;  %1268 = vmatmul.mubr.f32.vlgmr.msra.gmra.mxu0 %v1937_v26 }
  0x8f   : > { %1294 = vmatprep.subr.mxu1 %v1637_v0  ;;  %1305 = vmatprep.subr.mxu0 %v1637_v0 }
  0x90   : > { %1295 = vmatpush3.msra.mxu1 %v1906_v59  ;;  %1306 = vmatpush3.msra.mxu0 %v351_v22 }
  0x91   : > { %1296 = vmatprep.subr.mxu1 %v1637_v0  ;;  %1307 = vmatprep.subr.mxu0 %v1637_v0 }
  0x92   : > { %1297 = vmatpush3.msra.mxu1 %v1916_v63  ;;  %1308 = vmatpush3.msra.mxu0 %v358_v23 }
  0x93   : > { %1298 = vmatprep.subr.mxu1 %v1637_v0  ;;  %1309 = vmatprep.subr.mxu0 %v1637_v0 }
  0x94   : > { %1299 = vmatpush3.msra.mxu1 %v1931_v13  ;;  %1310 = vmatpush3.msra.mxu0 %v365_v24 }
  0x95   : > { %1300 = vmatprep.subr.mxu1 %v1637_v0  ;;  %1311 = vmatprep.subr.mxu0 %v1637_v0 }
  0x96   : > { %1301 = vmatpush3.msra.mxu1 %v1944_v32  ;;  %1302 = vmatprep.mubr.msk.f32.mxu1 %vm1638_vm0, %v1637_v0 }
  0x97   : > { %1312 = vmatpush3.msra.mxu0 %v372_v27  ;;  %1303 = vmatmul.mubr.f32.vlgmr.msra.gmra.mxu1 %v340_v42 }
  0x98   : > { %1313 = vmatprep.subr.mxu0 %v1637_v0  ;;  %1340 = vmatprep.subr.mxu1 %v1637_v0 }
  0x99   : > { %1314 = vmatpush3.msra.mxu0 %v379_v29  ;;  %1341 = vmatpush3.msra.mxu1 %v1804_v4 }
  0x9a   : > { %1315 = vmatprep.subr.mxu0 %v1637_v0  ;;  %1342 = vmatprep.subr.mxu1 %v1637_v0 }
  0x9b   : > { %1316 = vmatpush3.msra.mxu0 %v386_v40  ;;  %1343 = vmatpush3.msra.mxu1 %v1806_v5 }
  0x9c   : > { %1317 = vmatprep.subr.mxu0 %v1637_v0  ;;  %1344 = vmatprep.subr.mxu1 %v1637_v0 }
  0x9d   : > { %1318 = vmatpush3.msra.mxu0 %v393_v46  ;;  %1345 = vmatpush3.msra.mxu1 %v1808_v6 }
  0x9e   : > { %1319 = vmatprep.subr.mxu0 %v1637_v0  ;;  %1346 = vmatprep.subr.mxu1 %v1637_v0 }
  0x9f   : > { %1320 = vmatpush3.msra.mxu0 %v400_v53  ;;  %1347 = vmatpush3.msra.mxu1 %v1810_v10 }
  0xa0   : > { %1321 = vmatprep.subr.mxu0 %v1637_v0  ;;  %1348 = vmatprep.subr.mxu1 %v1637_v0 }
  0xa1   : > { %1322 = vmatpush3.msra.mxu0 %v407_v57  ;;  %1349 = vmatpush3.msra.mxu1 %v1812_v11 }
  0xa2   : > { %1323 = vmatprep.subr.mxu0 %v1637_v0  ;;  %1350 = vmatprep.subr.mxu1 %v1637_v0 }
  0xa3   : > { %1324 = vmatpush3.msra.mxu0 %v414_v3  ;;  %1351 = vmatpush3.msra.mxu1 %v1814_v12 }
  0xa4   : > { %1325 = vmatprep.subr.mxu0 %v1637_v0  ;;  %1352 = vmatprep.subr.mxu1 %v1637_v0 }
  0xa5   : > { %1326 = vmatpush3.msra.mxu0 %v421_v19  ;;  %1353 = vmatpush3.msra.mxu1 %v1823_v17  ;;  %v253_v17 = vlaneseq }
  0xa6   : > { %1327 = vmatprep.subr.mxu0 %v1637_v0  ;;  %1354 = vmatprep.subr.mxu1 %v1637_v0 }
  0xa7   : > { %1328 = vmatpush3.msra.mxu0 %v428_v37  ;;  %1355 = vmatpush3.msra.mxu1 %v1839_v25  ;;  %v254_v18 = vshrl.u32 %v253_v17, 7 }
  0xa8   : > { %1329 = vmatprep.subr.mxu0 %v1637_v0  ;;  %1356 = vmatprep.subr.mxu1 %v1637_v0 }
  0xa9   : > { %1330 = vmatpush3.msra.mxu0 %v435_v44  ;;  %1357 = vmatpush3.msra.mxu1 %v1843_v28  ;;  %v255_v20 = vsub.s32 0, %v254_v18  ;;  %v928_v19 = vsub.s32 2, %v254_v18 }
  0xaa   : > { %1331 = vmatprep.subr.mxu0 %v1637_v0  ;;  %1358 = vmatprep.subr.mxu1 %v1637_v0 }
  0xab   : > { %1332 = vmatpush3.msra.mxu0 %v442_v54  ;;  %1359 = vmatpush3.msra.mxu1 %v1863_v35  ;;  %v256_v22 = vrot.slane %v252_v21, %v255_v20  ;;  %v929_v31 = vrot.slane %v252_v21, %v928_v19 }
  0xac   : > { %1333 = vmatprep.subr.mxu0 %v1637_v0  ;;  %1360 = vmatprep.subr.mxu1 %v1637_v0 }
  0xad   : > { %1334 = vmatpush3.msra.mxu0 %v449_v2  ;;  %1361 = vmatpush3.msra.mxu1 %v1878_v45  ;;  %v904_v45 = vand.u32 127, %v253_v17 }
  0xae   : > { %1335 = vmatprep.subr.mxu0 %v1637_v0  ;;  %1362 = vmatprep.subr.mxu1 %v1637_v0 }
  0xaf   : > { %1336 = vmatpush3.msra.mxu0 %v456_v14  ;;  %1337 = vmatprep.mubr.msk.f32.mxu0 %vm1638_vm0, %v1637_v0  ;;  %vm905_vm1 = vcmp.lt.s32.totalorder %v904_v45, 32 }
  0xb0   : > { %1363 = vmatpush3.msra.mxu1 %v1886_v48  ;;  %1338 = vmatmul.mubr.f32.vlgmr.msra.gmra.mxu0 %v1912_v62 }
  0xb1   : > { %1364 = vmatprep.subr.mxu1 %v1637_v0  ;;  %1372 = vmatprep.mubr.msk.f32.mxu1 %vm1638_vm0, %v1637_v0 }
  0xb2   : > { %1365 = vmatpush3.msra.mxu1 %v1906_v59 }
  0xb3   : > { %1366 = vmatprep.subr.mxu1 %v1637_v0 }
  0xb4   : > { %1367 = vmatpush3.msra.mxu1 %v1916_v63 }
  0xb5   : > { %1368 = vmatprep.subr.mxu1 %v1637_v0 }
  0xb6   : > { %1369 = vmatpush3.msra.mxu1 %v1931_v13  ;;  %v923_v13 = vsub.s32 1, %v254_v18 }
  0xb7   : > { %1370 = vmatprep.subr.mxu1 %v1637_v0 }
  0xb8   : > { %1371 = vmatpush3.msra.mxu1 %v1944_v32  ;;  %v924_v26 = vrot.slane %v252_v21, %v923_v13 }
  0xb9   : > { %1373 = vmatmul.mubr.f32.vlgmr.msra.gmra.mxu1 %v1912_v62 }
 0x12e   : > { %v344_v4 = vpop.f32.mrf.mxu0 }
 0x12f   : > { %v345_v23 = vadd.f32 %v344_v4, %v256_v22 }
 0x130   : > { %v1199_v5 = vpop.f32.mrf.mxu0 }
 0x135   : > { %v495_v6 = vpop.f32.mrf.mxu1 }
 0x136   : > { %v496_v0 = vadd.f32 %v495_v6, %v345_v23 }
 0x137   : > { %v1234_v10 = vpop.f32.mrf.mxu1 }
 0x14e   : > { %v599_v11 = vpop.f32.mrf.mxu0 }
 0x14f   : > { %v600_v27 = vadd.f32 %v599_v11, %v496_v0 }
 0x150   : > { %v1269_v12 = vpop.f32.mrf.mxu0 }
 0x157   : > { %v688_v15 = vpop.f32.mrf.mxu1 }
 0x158   : > { %v689_v28 = vadd.f32 %v688_v15, %v600_v27 }
 0x159   : > { %v1304_v16 = vpop.f32.mrf.mxu1 }
 0x170   : > { %v807_v24 = vpop.f32.mrf.mxu0 }
 0x171   : > { %v808_v29 = vadd.f32 %v807_v24, %v689_v28 }
 0x172   : > { %v1339_v25 = vpop.f32.mrf.mxu0 }
 0x179   : > { %v894_v30 = vpop.f32.mrf.mxu1 }
 0x17a   : > { %v895_v34 = vadd.f32 %v894_v30, %v808_v29 }
 0x17b   : > { %v1374_v35 = vpop.f32.mrf.mxu1 }
 0x17c   : > { %v898_v40 = vmul.f32 0.5, %v895_v34 }
 0x17e   : > { %1462 = vtanh.f32 %v898_v40 }
 0x18b   : > { %v1463_v43 = vpop.eup %1462 }
 0x18c   : > { %v900_v46 = vmul.f32 0.5, %v1463_v43 }
 0x18e   : > { %v901_v47 = vadd.f32 0.5, %v900_v46 }
 0x190   : > { %v902_v48 = vadd.f32 %v901_v47, %v1889_v50 }
 0x192   : > { %v908_v53 = vsel %vm905_vm1, %v902_v48, 0.0 }
 0x193   : > { %909 = vadd.xlane.f32.xlu0 %v908_v53 }
 0x21c   : > { %v910_v55 = vpop.xlane.xlu0 %909 }
 0x21d   : > { %v911_v57 = vmul.f32 0.03125, %v910_v55 }
 0x21f   : > { %v912_v59 = vsub.f32 %v902_v48, %v911_v57 }
 0x221   : > { %v913_v61 = vsel %vm905_vm1, %v912_v59, 0.0 }
 0x222   : > { %v914_v62 = vmul.f32 %v913_v61, %v913_v61 }
 0x224   : > { %915 = vadd.xlane.f32.xlu0 %v914_v62 }
 0x2ad   : > { %v916_v63 = vpop.xlane.xlu0 %915 }
 0x2ae   : > { %v917_v3 = vmul.f32 0.03125, %v916_v63 }
 0x2b0   : > { %v918_v8 = vadd.f32 1e-05, %v917_v3 }
 0x2b2   : > { %1464 = vrsqrt.f32 %v918_v8 }
 0x2bf   : > { %v1465_v50 = vpop.eup %1464 }
 0x2c0   : > { %v920_v32 = vmul.f32 %v1465_v50, %v912_v59 }
 0x2c2   : > { %v925_v37 = vmul.f32 %v924_v26, %v920_v32 }
 0x2c4   : > { %v930_v38 = vadd.f32 %v929_v31, %v925_v37 }
 0x2c6   : > { %931 = vst [vmem:[%s234_s22] sm:$0xff] %v930_v38 }
 0x2c7   : > { %1559 = shalt.err (!%p1556_p5)
}
 0x2c8   : > { %s1560_s10 = scalar_lea.hbm %s944_s6, 128  ;;  %s1564_s26 = scalar_lea.hbm %s2212_s3, 256 }
 0x2c9   : > { %p1561_p10 = scmp.ne.s32.totalorder %s944_s6, %s1560_s10  ;;  %p1565_p6 = scmp.lt.s32.totalorder %s944_s6, %s2212_s3 }
 0x2ca   : > { %p1566_p12 = scmp.lt.s32.totalorder %s1564_s26, %s1560_s10 }
 0x2cb   : > { %p1562_p1 = pnand %p1561_p10, %p1755_p7 }
 0x2cc   : > { %p1567_p3 = por %p1566_p12, %p1565_p6 }
 0x2cd   : > { %p1563_p4 = pneg %p1562_p1 }
 0x2cf   : > { %p1568_p8 = pnand %p1567_p3, %p1563_p4 }
 0x2d1   : > { %1571 = shalt.err (!%p1568_p8)
}
 0x2d2   : > { %1385 = dma.vmem_to_hbm [thread:$0]  (%p1755_p7), %s947_s24, 128, %s944_s6, %s933_s7  }
 0x2d3 PF: > { %s958_s30 = sand.u32 1, %s1610_s12   ;;  %p2226_p9 = scmp.ne.s32.totalorder %s2219_s23, 0 }
 0x2d4   : > { %p2227_p11 = scmp.ge.s32.totalorder %s1630_s17, 2  ;;  %s959_s20 = scalar_lea.sflag [#allocation4], %s958_s30 }
 0x2d6   : > { %p1399_p2 = pnand %p2227_p11, %p2226_p9 }
 0x2d8   : > { %p1400_p13 = pneg %p1399_p2 }
 0x2da   : > { %1605 = dma.done.wait (%p1400_p13), %s959_s20, 128  }
 0x2db   : > { %1607 = vsyncadd (%p1400_p13), %s959_s20, 4294967168  ;;  %s20_s17 = sadd.s32 1, %s1630_s17   ;;  %s2228_s12 = smov %s1614_s13 }
 0x2dc   : > { %p17_p0 = scmp.ge.s32.totalorder %s20_s17, 4   ;;  %s2229_s13 = smov %s1618_s14 }
 0x2dd   : > { %s2230_s14 = smov %s1764_s29  ;;  %s2231_s15 = smov %s1626_s16 }
 0x2de   : > { %s2232_s16 = smov %s2234_s11  ;;  %19 = sbr.rel (!%p17_p0) target bundleno = 7 (0x7), region = 86 }
 0x2e3   :  { %964 = vsyncpa [#allocation3], 1 }
 0x2e4   :  { %966 = vsyncpa [#allocation3 + $0x1], 1 }
 0x2e5   :  { %967 = vsyncpa [#allocation6], 1 }
 0x2e6   :  { %968 = vsyncpa [#allocation4], 1 }
 0x2e7   :  { %970 = vsyncpa [#allocation4 + $0x1], 1 }

// kernel: tpu_custom_call.1
= control target key start
LH: loop header
LB: loop body
LE: loop exit
PB: predicated region body
PF: predicated region fallthrough
CT: control target
= control target key end

     0   :  { %8 = vsyncpa [#allocation3], 0  ;;  %s2209_s0 = inlined_call_operand.hbm [shape: f32[16,128], index: 0, kind: input, shape index: {}]   ;;  %s2210_s1 = inlined_call_operand.hbm [shape: f32[128,128], index: 1, kind: input, shape index: {}]   ;;  %s2211_s2 = inlined_call_operand.hbm [shape: f32[8,128], index: 2, kind: input, shape index: {}]   ;;  %s2212_s3 = inlined_call_operand.hbm [shape: f32[16,128], index: 3, kind: output, shape index: {}]  }
   0x1   :  { %10 = vsyncpa [#allocation3 + $0x1], 0 }
   0x2   :  { %11 = vsyncpa [#allocation6], 0 }
   0x3   :  { %12 = vsyncpa [#allocation4], 0 }
   0x4   :  { %14 = vsyncpa [#allocation4 + $0x1], 0  ;;  %s1660_s12 = smov 0   ;;  %s1662_s13 = smov 0  }
   0x5   :  { %s1664_s14 = smov 0   ;;  %s1666_s15 = smov 0  }
   0x6   :  { %s1668_s16 = smov 0   ;;  %s1670_s17 = smov 0  }
   0x7 LB: > { %s1046_s18 = sadd.s32 4294967295, %s1630_s17   ;;  %s1047_s19 = sadd.s32 4294967294, %s1630_s17   ;;  %s1630_s17 = sphi %s1670_s17, %s20_s17   ;;  %s1626_s16 = sphi %s1668_s16, %s2232_s16   ;;  %s1622_s15 = sphi %s1666_s15, %s2231_s15   ;;  %s1618_s14 = sphi %s1664_s14, %s2230_s14   ;;  %s1614_s13 = sphi %s1662_s13, %s2229_s13   ;;  %s1610_s12 = sphi %s1660_s12, %s2228_s12  }
   0x8   : > { %p54_p0 = scmp.ne.s32.totalorder %s1614_s13, %s1610_s12  ;;  %p1694_p1 = scmp.eq.s32.totalorder %s1046_s18, 0 }
   0x9   : > { %p1698_p2 = scmp.eq.s32.totalorder %s1046_s18, 1  ;;  %p131_p3 = scmp.eq.s32.totalorder %s1047_s19, 1 }
   0xa   : > { %s2216_s20 = scalar_select %p1694_p1, 1, 0 }
   0xb   : > { %p1704_p4 = por %p1694_p1, %p54_p0  ;;  %p1048_p5 = scmp.ge.s32.totalorder %s1630_s17, 1 }
   0xc   : > { %p1709_p6 = por %p131_p3, %p54_p0  ;;  %p138_p7 = scmp.lt.s32.totalorder %s1630_s17, 3 }
   0xd   : > { %s2218_s22 = scalar_select %p1704_p4, 1, 0 }
   0xe   : > { %s2219_s23 = scalar_select %p1709_p6, 1, 0 }
   0xf   : > { %p1714_p8 = pnand %p1048_p5, %p138_p7  ;;  %s1632_s25 = smov [#allocation5]  }
  0x10   : > { %s152_s26 = sshll.u32 %s1632_s25, 4  ;;  %s1633_s28 = smov [#allocation7]   ;;  %s153_s26 = int_to_ptr.vmem [resolvable:$true] %s152_s26 }
  0x11   : > { %p1387_p9 = pneg %p1714_p8  ;;  %s166_s29 = sshll.u32 %s1633_s28, 4  ;;  %s167_s29 = int_to_ptr.vmem [resolvable:$true] %s166_s29 }
  0x12   : > { %s1477_s30 = scalar_lea.vmem %s153_s26, 2048  ;;  %p1485_p5 = scmp.lt.s32.totalorder %s153_s26, %s153_s26 }
  0x13   : > { %p1723_p11 = pnand %p1387_p9, %p1694_p1  ;;  %p1478_p13 = scmp.ne.s32.totalorder %s153_s26, %s1477_s30 }
  0x14   : > { %p1486_p7 = scmp.lt.s32.totalorder %s1477_s30, %s1477_s30 }
  0x15   : > { %p1468_p12 = pneg %p1723_p11 }
  0x16   : > { %p1487_p10 = por %p1486_p7, %p1485_p5 }
  0x17   : > { %p1480_p0 = pnand %p1478_p13, %p1468_p12 }
  0x19   : > { %p1481_p3 = pneg %p1480_p0 }
  0x1b   : > { %p1488_p9 = pnand %p1487_p10, %p1481_p3 }
  0x1d   : > { %1491 = shalt.err (!%p1488_p9)
}
  0x1e   : > { %s1634_s4 = smov 128   ;;  %s1635_s5 = smov 8  }
  0x1f   : > { %1390 = dma.hbm_to_vmem [thread:$0]  (!%p1723_p11), %s2210_s1, 2048, %s153_s26, [#allocation6], %s1634_s4, %s1634_s4, %s1635_s5  }
  0x20   : > { %s1503_s8 = scalar_lea.vmem %s167_s29, 128  ;;  %p1511_p1 = scmp.lt.s32.totalorder %s167_s29, %s167_s29 }
  0x21   : > { %p1504_p6 = scmp.ne.s32.totalorder %s167_s29, %s1503_s8  ;;  %p1512_p4 = scmp.lt.s32.totalorder %s1503_s8, %s1503_s8 }
  0x23   : > { %p1506_p13 = pnand %p1504_p6, %p1468_p12  ;;  %p1513_p5 = por %p1512_p4, %p1511_p1 }
  0x25   : > { %p1507_p0 = pneg %p1506_p13 }
  0x27   : > { %p1514_p10 = pnand %p1513_p5, %p1507_p0 }
  0x29   : > { %1517 = shalt.err (!%p1514_p10)
}
  0x2a   : > { %1393 = dma.hbm_to_vmem [thread:$0]  (!%p1723_p11), %s2211_s2, 128, %s167_s29, [#allocation6]  }
  0x2b   : > { %s32_s11 = sadd.s32 1, %s1626_s16  ;;  %s41_s18 = sadd.s32 1, %s1618_s14 }
  0x2c   : > { %p34_p1 = scmp.ge.s32.totalorder %s32_s11, 2  ;;  %p48_p4 = scmp.ne.s32.totalorder %s1618_s14, %s1614_s13 }
  0x2d   : > { %p49_p6 = scmp.eq.s32.totalorder %s1630_s17, 0  ;;  %p1404_p12 = scmp.lt.s32.totalorder %s1630_s17, 2 }
  0x2e   : > { %s2234_s11 = smov (%p34_p1, %s32_s11), 0  ;;  %p1755_p7 = por %p1698_p2, %p48_p4 }
  0x2f   : > { %p50_p3 = por %p49_p6, %p48_p4  ;;  %s36_s25 = ssub.s32 %s1626_s16, %s2234_s11 }
  0x30   : > { %s177_s26 = sand.u32 1, %s1618_s14   ;;  %p39_p9 = scmp.eq.s32.totalorder %s36_s25, 0 }
  0x31   : > { %s1052_s27 = sshll.u32 %s177_s26, 3  ;;  %s1053_s28 = sshll.u32 %s1626_s16, 7 }
  0x32   : > { %s1764_s29 = scalar_select %p39_p9, %s1618_s14, %s41_s18  }
  0x33   : > { %s187_s5 = scalar_lea.hbm %s2209_s0, %s1053_s28  ;;  %s181_s6 = scalar_lea.vmem [#allocation2], %s1052_s27 }
  0x34   : > { %s189_s7 = sshll.u32 %s181_s6, 4  ;;  %p1771_p11 = pnand %p1404_p12, %p50_p3  ;;  %s190_s7 = int_to_ptr.vmem [resolvable:$true] %s189_s7 }
  0x35   : > { %s178_s8 = scalar_lea.sflag [#allocation3], %s177_s26  ;;  %s1531_s9 = scalar_lea.vmem %s190_s7, 128 }
  0x36   : > { %p1520_p2 = pneg %p1771_p11  ;;  %p1532_p13 = scmp.ne.s32.totalorder %s190_s7, %s1531_s9 }
  0x37   : > { %s1636_s10 = smov [#allocation2]  }
  0x38   : > { %p1534_p0 = pnand %p1532_p13, %p1520_p2  ;;  %s1536_s18 = sshll.u32 %s1636_s10, 4  ;;  %s1537_s18 = int_to_ptr.vmem [resolvable:$false] %s1536_s18 }
  0x39   : > { %s1538_s25 = scalar_lea.vmem %s1537_s18, 256  ;;  %p1539_p10 = scmp.lt.s32.totalorder %s190_s7, %s1537_s18 }
  0x3a   : > { %p1535_p5 = pneg %p1534_p0  ;;  %p1540_p1 = scmp.lt.s32.totalorder %s1538_s25, %s1531_s9 }
  0x3c   : > { %p1541_p4 = por %p1540_p1, %p1539_p10 }
  0x3e   : > { %p1542_p6 = pnand %p1541_p4, %p1535_p5 }
  0x40   : > { %1545 = shalt.err (!%p1542_p6)
}
  0x41   : > { %1397 = dma.hbm_to_vmem [thread:$0]  (!%p1771_p11), %s187_s5, 128, %s190_s7, %s178_s8  }
  0x42   : > { %198 = sbr.rel (%p1714_p8) target bundleno = 723 (0x2d3), region = 32  ;;  %s1782_s26 = sand.u32 (!%p1714_p8), 1, %s1614_s13  }
  0x43   : > { %s1055_s27 = sshll.u32 (!%p1714_p8), %s1782_s26, 3  ;;  %s201_s28 = scalar_lea.sflag (!%p1714_p8), [#allocation3], %s1782_s26 }
  0x44   : > { %s1788_s30 = scalar_lea.vmem (!%p1714_p8), [#allocation2], %s1055_s27  ;;  %p2224_p12 = scmp.ne.s32.totalorder (!%p1714_p8), %s2218_s22, 0 }
  0x47   : > { %1597 = dma.done.wait (%p2224_p12), %s201_s28, 128  }
  0x48   : > { %1599 = vsyncadd (%p2224_p12), %s201_s28, 4294967168  ;;  %p2225_p3 = scmp.ne.s32.totalorder %s2216_s20, 0 }
  0x4a   : > { %1601 = dma.done.wait (%p2225_p3), [#allocation6], 2176  }
  0x4b   : > { %1603 = vsyncadd (%p2225_p3), [#allocation6], 4294965120  ;;  %v1637_v0 = vmov 0.0   ;;  %vm1638_vm0 = vmmov 0   ;;  %v251_v1 = vld [vmem:[#allocation5 + $0x78] sm:$0xff]  ;;  %v250_v2 = vld [vmem:[#allocation5 + $0x70] sm:$0xff] }
  0x4c   : > { %1165 = vmatprep.subr.mxu0 %v1637_v0  ;;  %1200 = vmatprep.subr.mxu1 %v1637_v0  ;;  %v249_v3 = vld [vmem:[#allocation5 + $0x68] sm:$0xff]  ;;  %v1804_v4 = vand.u32 4294901760, %v251_v1  ;;  %v1806_v5 = vand.u32 4294901760, %v250_v2  ;;  %v248_v7 = vld [vmem:[#allocation5 + $0x60] sm:$0xff]  ;;  %v247_v8 = vld [vmem:[#allocation5 + $0x58] sm:$0xff]  ;;  %s1060_s20 = sshll.u32 %s1622_s15, 7 }
  0x4d   : > { %1197 = vmatprep.mubr.msk.f32.mxu0 %vm1638_vm0, %v1637_v0  ;;  %1232 = vmatprep.mubr.msk.f32.mxu1 %vm1638_vm0, %v1637_v0  ;;  %v1808_v6 = vand.u32 4294901760, %v249_v3  ;;  %v246_v9 = vld [vmem:[#allocation5 + $0x50] sm:$0xff]  ;;  %v1810_v10 = vand.u32 4294901760, %v248_v7  ;;  %v1812_v11 = vand.u32 4294901760, %v247_v8  ;;  %v245_v13 = vld [vmem:[#allocation5 + $0x48] sm:$0xff]  ;;  %v244_v14 = vld [vmem:[#allocation5 + $0x40] sm:$0xff]  ;;  %s944_s6 = scalar_lea.hbm %s2212_s3, %s1060_s20 }
  0x4e   : > { %v1814_v12 = vand.u32 4294901760, %v246_v9  ;;  %1166 = vmatpush3.msra.mxu0 %v1804_v4  ;;  %v1818_v15 = vsub.f32 %v251_v1, %v1804_v4  ;;  %v1821_v16 = vsub.f32 %v250_v2, %v1806_v5  ;;  %v1823_v17 = vand.u32 4294901760, %v245_v13  ;;  %v243_v19 = vld [vmem:[#allocation5 + $0x38] sm:$0xff]  ;;  %v242_v26 = vld [vmem:[#allocation5 + $0x30] sm:$0xff]  ;;  %v241_v36 = vld [vmem:[#allocation5 + $0x28] sm:$0xff]  ;;  %s234_s22 = scalar_lea.vmem [#allocation8], %s1055_s27 }
  0x4f   : > { %v1826_v18 = vsub.f32 %v249_v3, %v1808_v6  ;;  %1167 = vmatprep.subr.mxu0 %v1637_v0  ;;  %v1830_v20 = vsub.f32 %v248_v7, %v1810_v10  ;;  %v1833_v21 = vsub.f32 %v247_v8, %v1812_v11  ;;  %v1839_v25 = vand.u32 4294901760, %v244_v14  ;;  %v240_v41 = vld [vmem:[#allocation5 + $0x20] sm:$0xff]  ;;  %v239_v49 = vld [vmem:[#allocation5 + $0x18] sm:$0xff]  ;;  %v238_v54 = vld [vmem:[#allocation5 + $0x10] sm:$0xff]  ;;  %s946_s24 = sshll.u32 %s234_s22, 4  ;;  %s933_s7 = scalar_lea.sflag [#allocation4], %s1782_s26  ;;  %s947_s24 = int_to_ptr.vmem [resolvable:$true] %s946_s24 }
  0x50   : > { %1168 = vmatpush3.msra.mxu0 %v1806_v5  ;;  %v351_v22 = vand.u32 4294901760, %v1818_v15  ;;  %v358_v23 = vand.u32 4294901760, %v1821_v16  ;;  %v1843_v28 = vand.u32 4294901760, %v243_v19  ;;  %v1847_v30 = vsub.f32 %v246_v9, %v1814_v12  ;;  %v1889_v50 = vld [vmem:[%s1788_s30] sm:$0xff]  ;;  %v237_v60 = vld [vmem:[#allocation5 + $0x8] sm:$0xff]  ;;  %v236_v7 = vld [vmem:[#allocation5] sm:$0xff] }
  0x51   : > { %v365_v24 = vand.u32 4294901760, %v1826_v18  ;;  %1169 = vmatprep.subr.mxu0 %v1637_v0  ;;  %v372_v27 = vand.u32 4294901760, %v1830_v20  ;;  %v379_v29 = vand.u32 4294901760, %v1833_v21  ;;  %v1860_v34 = vsub.f32 %v245_v13, %v1823_v17  ;;  %s1546_s21 = scalar_lea.vmem %s947_s24, 128  ;;  %s1639_s8 = smov [#allocation8]  }
  0x52   : > { %1170 = vmatpush3.msra.mxu0 %v1808_v6  ;;  %v352_v31 = vsub.f32 %v1818_v15, %v351_v22  ;;  %v359_v32 = vsub.f32 %v1821_v16, %v358_v23  ;;  %v1863_v35 = vand.u32 4294901760, %v242_v26  ;;  %v386_v40 = vand.u32 4294901760, %v1847_v30  ;;  %p1547_p8 = scmp.ne.s32.totalorder %s947_s24, %s1546_s21  ;;  %s1550_s9 = sshll.u32 %s1639_s8, 4  ;;  %s1551_s9 = int_to_ptr.vmem [resolvable:$false] %s1550_s9 }
  0x53   : > { %v366_v33 = vsub.f32 %v1826_v18, %v365_v24  ;;  %1171 = vmatprep.subr.mxu0 %v1637_v0  ;;  %v373_v39 = vsub.f32 %v1830_v20, %v372_v27  ;;  %v380_v42 = vsub.f32 %v1833_v21, %v379_v29  ;;  %v1875_v43 = vsub.f32 %v244_v14, %v1839_v25  ;;  %s1552_s15 = scalar_lea.vmem %s1551_s9, 256  ;;  %p1553_p2 = scmp.lt.s32.totalorder %s947_s24, %s1551_s9 }
  0x54   : > { %1172 = vmatpush3.msra.mxu0 %v1810_v10  ;;  %v353_v37 = vand.u32 4294901760, %v352_v31  ;;  %v360_v38 = vand.u32 4294901760, %v359_v32  ;;  %v1878_v45 = vand.u32 4294901760, %v241_v36  ;;  %v393_v46 = vand.u32 4294901760, %v1860_v34  ;;  %p1548_p9 = pnand %p1547_p8, %p1755_p7  ;;  %p1554_p13 = scmp.lt.s32.totalorder %s1552_s15, %s1546_s21 }
  0x55   : > { %1173 = vmatprep.subr.mxu0 %v1637_v0  ;;  %v367_v44 = vand.u32 4294901760, %v366_v33  ;;  %v1882_v47 = vsub.f32 %v243_v19, %v1843_v28  ;;  %v1886_v48 = vand.u32 4294901760, %v240_v41  ;;  %v374_v51 = vand.u32 4294901760, %v373_v39 }
  0x56   : > { %1174 = vmatpush3.msra.mxu0 %v1812_v11  ;;  %1201 = vmatpush3.msra.mxu1 %v353_v37  ;;  %v387_v52 = vsub.f32 %v1847_v30, %v386_v40  ;;  %v400_v53 = vand.u32 4294901760, %v1875_v43  ;;  %v1897_v55 = vsub.f32 %v242_v26, %v1863_v35  ;;  %v381_v56 = vand.u32 4294901760, %v380_v42  ;;  %p1549_p11 = pneg %p1548_p9  ;;  %p1555_p0 = por %p1554_p13, %p1553_p2 }
  0x57   : > { %1175 = vmatprep.subr.mxu0 %v1637_v0  ;;  %1202 = vmatprep.subr.mxu1 %v1637_v0  ;;  %v407_v57 = vand.u32 4294901760, %v1882_v47  ;;  %v394_v58 = vsub.f32 %v1860_v34, %v393_v46  ;;  %v1906_v59 = vand.u32 4294901760, %v239_v49  ;;  %v1909_v61 = vsub.f32 %v241_v36, %v1878_v45 }
  0x58   : > { %1176 = vmatpush3.msra.mxu0 %v1814_v12  ;;  %1203 = vmatpush3.msra.mxu1 %v360_v38  ;;  %v1912_v62 = vand.u32 4294901760, %v1889_v50  ;;  %v1916_v63 = vand.u32 4294901760, %v238_v54  ;;  %v388_v1 = vand.u32 4294901760, %v387_v52  ;;  %v401_v2 = vsub.f32 %v1875_v43, %v400_v53  ;;  %p1556_p5 = pnand %p1555_p0, %p1549_p11 }
  0x59   : > { %1177 = vmatprep.subr.mxu0 %v1637_v0  ;;  %1204 = vmatprep.subr.mxu1 %v1637_v0  ;;  %v414_v3 = vand.u32 4294901760, %v1897_v55  ;;  %v1924_v8 = vsub.f32 %v240_v41, %v1886_v48  ;;  %v408_v9 = vsub.f32 %v1882_v47, %v407_v57  ;;  %v1931_v13 = vand.u32 4294901760, %v237_v60 }
  0x5a   : > { %1178 = vmatpush3.msra.mxu0 %v1823_v17  ;;  %1205 = vmatpush3.msra.mxu1 %v367_v44  ;;  %v395_v14 = vand.u32 4294901760, %v394_v58  ;;  %v421_v19 = vand.u32 4294901760, %v1909_v61  ;;  %v1937_v26 = vsub.f32 %v1889_v50, %v1912_v62  ;;  %v1940_v31 = vsub.f32 %v239_v49, %v1906_v59 }
  0x5b   : > { %1179 = vmatprep.subr.mxu0 %v1637_v0  ;;  %1206 = vmatprep.subr.mxu1 %v1637_v0  ;;  %v1944_v32 = vand.u32 4294901760, %v236_v7  ;;  %v402_v33 = vand.u32 4294901760, %v401_v2  ;;  %v415_v36 = vsub.f32 %v1897_v55, %v414_v3  ;;  %v428_v37 = vand.u32 4294901760, %v1924_v8 }
  0x5c   : > { %1180 = vmatpush3.msra.mxu0 %v1839_v25  ;;  %1207 = vmatpush3.msra.mxu1 %v374_v51  ;;  %v1952_v38 = vsub.f32 %v238_v54, %v1916_v63  ;;  %v409_v39 = vand.u32 4294901760, %v408_v9  ;;  %v422_v41 = vsub.f32 %v1909_v61, %v421_v19  ;;  %v340_v42 = vand.u32 4294901760, %v1937_v26 }
  0x5d   : > { %1181 = vmatprep.subr.mxu0 %v1637_v0  ;;  %1208 = vmatprep.subr.mxu1 %v1637_v0  ;;  %v435_v44 = vand.u32 4294901760, %v1940_v31  ;;  %v1963_v49 = vsub.f32 %v237_v60, %v1931_v13  ;;  %v416_v51 = vand.u32 4294901760, %v415_v36  ;;  %v429_v52 = vsub.f32 %v1924_v8, %v428_v37 }
  0x5e   : > { %1182 = vmatpush3.msra.mxu0 %v1843_v28  ;;  %1209 = vmatpush3.msra.mxu1 %v381_v56  ;;  %v442_v54 = vand.u32 4294901760, %v1952_v38  ;;  %v1973_v56 = vsub.f32 %v236_v7, %v1944_v32  ;;  %v423_v58 = vand.u32 4294901760, %v422_v41  ;;  %v341_v60 = vsub.f32 %v1937_v26, %v340_v42 }
  0x5f   : > { %1183 = vmatprep.subr.mxu0 %v1637_v0  ;;  %1210 = vmatprep.subr.mxu1 %v1637_v0  ;;  %v449_v2 = vand.u32 4294901760, %v1963_v49  ;;  %v430_v7 = vand.u32 4294901760, %v429_v52 }
  0x60   : > { %1184 = vmatpush3.msra.mxu0 %v1863_v35  ;;  %1211 = vmatpush3.msra.mxu1 %v388_v1  ;;  %v436_v1 = vsub.f32 %v1940_v31, %v435_v44  ;;  %v443_v9 = vsub.f32 %v1952_v38, %v442_v54 }
  0x61   : > { %1185 = vmatprep.subr.mxu0 %v1637_v0  ;;  %1212 = vmatprep.subr.mxu1 %v1637_v0 }
  0x62   : > { %1186 = vmatpush3.msra.mxu0 %v1878_v45  ;;  %1213 = vmatpush3.msra.mxu1 %v395_v14  ;;  %v456_v14 = vand.u32 4294901760, %v1973_v56  ;;  %v437_v36 = vand.u32 4294901760, %v436_v1  ;;  %v444_v41 = vand.u32 4294901760, %v443_v9 }
  0x63   : > { %1187 = vmatprep.subr.mxu0 %v1637_v0  ;;  %1214 = vmatprep.subr.mxu1 %v1637_v0 }
  0x64   : > { %1188 = vmatpush3.msra.mxu0 %v1886_v48  ;;  %1215 = vmatpush3.msra.mxu1 %v402_v33  ;;  %v342_v33 = vand.u32 4294901760, %v341_v60 }
  0x65   : > { %1189 = vmatprep.subr.mxu0 %v1637_v0  ;;  %1216 = vmatprep.subr.mxu1 %v1637_v0 }
  0x66   : > { %1190 = vmatpush3.msra.mxu0 %v1906_v59  ;;  %1217 = vmatpush3.msra.mxu1 %v409_v39  ;;  %v450_v39 = vsub.f32 %v1963_v49, %v449_v2 }
  0x67   : > { %1191 = vmatprep.subr.mxu0 %v1637_v0  ;;  %1218 = vmatprep.subr.mxu1 %v1637_v0 }
  0x68   : > { %1192 = vmatpush3.msra.mxu0 %v1916_v63  ;;  %1219 = vmatpush3.msra.mxu1 %v416_v51  ;;  %v457_v51 = vsub.f32 %v1973_v56, %v456_v14  ;;  %v451_v52 = vand.u32 4294901760, %v450_v39 }
  0x69   : > { %1193 = vmatprep.subr.mxu0 %v1637_v0  ;;  %1220 = vmatprep.subr.mxu1 %v1637_v0 }
  0x6a   : > { %1194 = vmatpush3.msra.mxu0 %v1931_v13  ;;  %1221 = vmatpush3.msra.mxu1 %v423_v58  ;;  %v458_v58 = vand.u32 4294901760, %v457_v51 }
  0x6b   : > { %1195 = vmatprep.subr.mxu0 %v1637_v0  ;;  %1222 = vmatprep.subr.mxu1 %v1637_v0 }
  0x6c   : > { %1196 = vmatpush3.msra.mxu0 %v1944_v32  ;;  %1223 = vmatpush3.msra.mxu1 %v430_v7 }
  0x6d   : > { %1224 = vmatprep.subr.mxu1 %v1637_v0  ;;  %1235 = vmatprep.subr.mxu0 %v1637_v0 }
  0x6e   : > { %1198 = vmatmul.mubr.f32.vlgmr.msra.gmra.mxu0 %v342_v33  ;;  %1225 = vmatpush3.msra.mxu1 %v437_v36 }
  0x6f   : > { %1236 = vmatpush3.msra.mxu0 %v1818_v15  ;;  %1226 = vmatprep.subr.mxu1 %v1637_v0 }
  0x70   : > { %1237 = vmatprep.subr.mxu0 %v1637_v0  ;;  %1227 = vmatpush3.msra.mxu1 %v444_v41 }
  0x71   : > { %1238 = vmatpush3.msra.mxu0 %v1821_v16  ;;  %1228 = vmatprep.subr.mxu1 %v1637_v0 }
  0x72   : > { %1239 = vmatprep.subr.mxu0 %v1637_v0  ;;  %1229 = vmatpush3.msra.mxu1 %v451_v52 }
  0x73   : > { %1240 = vmatpush3.msra.mxu0 %v1826_v18  ;;  %1230 = vmatprep.subr.mxu1 %v1637_v0 }
  0x74   : > { %1241 = vmatprep.subr.mxu0 %v1637_v0  ;;  %1231 = vmatpush3.msra.mxu1 %v458_v58 }
  0x75   : > { %1242 = vmatpush3.msra.mxu0 %v1830_v20  ;;  %1233 = vmatmul.mubr.f32.vlgmr.msra.gmra.mxu1 %v1912_v62 }
  0x76   : > { %1243 = vmatprep.subr.mxu0 %v1637_v0  ;;  %1270 = vmatprep.subr.mxu1 %v1637_v0 }
  0x77   : > { %1244 = vmatpush3.msra.mxu0 %v1833_v21  ;;  %1271 = vmatpush3.msra.mxu1 %v1804_v4  ;;  %v252_v21 = vld [vmem:[#allocation7] sm:$0xff] }
  0x78   : > { %1245 = vmatprep.subr.mxu0 %v1637_v0  ;;  %1272 = vmatprep.subr.mxu1 %v1637_v0 }
  0x79   : > { %1246 = vmatpush3.msra.mxu0 %v1847_v30  ;;  %1273 = vmatpush3.msra.mxu1 %v1806_v5 }
  0x7a   : > { %1247 = vmatprep.subr.mxu0 %v1637_v0  ;;  %1274 = vmatprep.subr.mxu1 %v1637_v0 }
  0x7b   : > { %1248 = vmatpush3.msra.mxu0 %v1860_v34  ;;  %1275 = vmatpush3.msra.mxu1 %v1808_v6 }
  0x7c   : > { %1249 = vmatprep.subr.mxu0 %v1637_v0  ;;  %1276 = vmatprep.subr.mxu1 %v1637_v0 }
  0x7d   : > { %1250 = vmatpush3.msra.mxu0 %v1875_v43  ;;  %1277 = vmatpush3.msra.mxu1 %v1810_v10 }
  0x7e   : > { %1251 = vmatprep.subr.mxu0 %v1637_v0  ;;  %1278 = vmatprep.subr.mxu1 %v1637_v0 }
  0x7f   : > { %1252 = vmatpush3.msra.mxu0 %v1882_v47  ;;  %1279 = vmatpush3.msra.mxu1 %v1812_v11 }
  0x80   : > { %1253 = vmatprep.subr.mxu0 %v1637_v0  ;;  %1280 = vmatprep.subr.mxu1 %v1637_v0 }
  0x81   : > { %1254 = vmatpush3.msra.mxu0 %v1897_v55  ;;  %1281 = vmatpush3.msra.mxu1 %v1814_v12 }
  0x82   : > { %1255 = vmatprep.subr.mxu0 %v1637_v0  ;;  %1282 = vmatprep.subr.mxu1 %v1637_v0 }
  0x83   : > { %1256 = vmatpush3.msra.mxu0 %v1909_v61  ;;  %1283 = vmatpush3.msra.mxu1 %v1823_v17 }
  0x84   : > { %1257 = vmatprep.subr.mxu0 %v1637_v0  ;;  %1284 = vmatprep.subr.mxu1 %v1637_v0 }
  0x85   : > { %1258 = vmatpush3.msra.mxu0 %v1924_v8  ;;  %1285 = vmatpush3.msra.mxu1 %v1839_v25 }
  0x86   : > { %1259 = vmatprep.subr.mxu0 %v1637_v0  ;;  %1286 = vmatprep.subr.mxu1 %v1637_v0 }
  0x87   : > { %1260 = vmatpush3.msra.mxu0 %v1940_v31  ;;  %1287 = vmatpush3.msra.mxu1 %v1843_v28 }
  0x88   : > { %1261 = vmatprep.subr.mxu0 %v1637_v0  ;;  %1288 = vmatprep.subr.mxu1 %v1637_v0 }
  0x89   : > { %1262 = vmatpush3.msra.mxu0 %v1952_v38  ;;  %1289 = vmatpush3.msra.mxu1 %v1863_v35 }
  0x8a   : > { %1263 = vmatprep.subr.mxu0 %v1637_v0  ;;  %1290 = vmatprep.subr.mxu1 %v1637_v0 }
  0x8b   : > { %1264 = vmatpush3.msra.mxu0 %v1963_v49  ;;  %1291 = vmatpush3.msra.mxu1 %v1878_v45 }
  0x8c   : > { %1265 = vmatprep.subr.mxu0 %v1637_v0  ;;  %1292 = vmatprep.subr.mxu1 %v1637_v0 }
  0x8d   : > { %1266 = vmatpush3.msra.mxu0 %v1973_v56  ;;  %1267 = vmatprep.mubr.msk.f32.mxu0 %vm1638_vm0, %v1637_v0 }
  0x8e   : > { %1293 = vmatpush3.msra.mxu1 %v1886_v48  ;;  %1268 = vmatmul.mubr.f32.vlgmr.msra.gmra.mxu0 %v1937_v26 }
  0x8f   : > { %1294 = vmatprep.subr.mxu1 %v1637_v0  ;;  %1305 = vmatprep.subr.mxu0 %v1637_v0 }
  0x90   : > { %1295 = vmatpush3.msra.mxu1 %v1906_v59  ;;  %1306 = vmatpush3.msra.mxu0 %v351_v22 }
  0x91   : > { %1296 = vmatprep.subr.mxu1 %v1637_v0  ;;  %1307 = vmatprep.subr.mxu0 %v1637_v0 }
  0x92   : > { %1297 = vmatpush3.msra.mxu1 %v1916_v63  ;;  %1308 = vmatpush3.msra.mxu0 %v358_v23 }
  0x93   : > { %1298 = vmatprep.subr.mxu1 %v1637_v0  ;;  %1309 = vmatprep.subr.mxu0 %v1637_v0 }
  0x94   : > { %1299 = vmatpush3.msra.mxu1 %v1931_v13  ;;  %1310 = vmatpush3.msra.mxu0 %v365_v24 }
  0x95   : > { %1300 = vmatprep.subr.mxu1 %v1637_v0  ;;  %1311 = vmatprep.subr.mxu0 %v1637_v0 }
  0x96   : > { %1301 = vmatpush3.msra.mxu1 %v1944_v32  ;;  %1302 = vmatprep.mubr.msk.f32.mxu1 %vm1638_vm0, %v1637_v0 }
  0x97   : > { %1312 = vmatpush3.msra.mxu0 %v372_v27  ;;  %1303 = vmatmul.mubr.f32.vlgmr.msra.gmra.mxu1 %v340_v42 }
  0x98   : > { %1313 = vmatprep.subr.mxu0 %v1637_v0  ;;  %1340 = vmatprep.subr.mxu1 %v1637_v0 }
  0x99   : > { %1314 = vmatpush3.msra.mxu0 %v379_v29  ;;  %1341 = vmatpush3.msra.mxu1 %v1804_v4 }
  0x9a   : > { %1315 = vmatprep.subr.mxu0 %v1637_v0  ;;  %1342 = vmatprep.subr.mxu1 %v1637_v0 }
  0x9b   : > { %1316 = vmatpush3.msra.mxu0 %v386_v40  ;;  %1343 = vmatpush3.msra.mxu1 %v1806_v5 }
  0x9c   : > { %1317 = vmatprep.subr.mxu0 %v1637_v0  ;;  %1344 = vmatprep.subr.mxu1 %v1637_v0 }
  0x9d   : > { %1318 = vmatpush3.msra.mxu0 %v393_v46  ;;  %1345 = vmatpush3.msra.mxu1 %v1808_v6 }
  0x9e   : > { %1319 = vmatprep.subr.mxu0 %v1637_v0  ;;  %1346 = vmatprep.subr.mxu1 %v1637_v0 }
  0x9f   : > { %1320 = vmatpush3.msra.mxu0 %v400_v53  ;;  %1347 = vmatpush3.msra.mxu1 %v1810_v10 }
  0xa0   : > { %1321 = vmatprep.subr.mxu0 %v1637_v0  ;;  %1348 = vmatprep.subr.mxu1 %v1637_v0 }
  0xa1   : > { %1322 = vmatpush3.msra.mxu0 %v407_v57  ;;  %1349 = vmatpush3.msra.mxu1 %v1812_v11 }
  0xa2   : > { %1323 = vmatprep.subr.mxu0 %v1637_v0  ;;  %1350 = vmatprep.subr.mxu1 %v1637_v0 }
  0xa3   : > { %1324 = vmatpush3.msra.mxu0 %v414_v3  ;;  %1351 = vmatpush3.msra.mxu1 %v1814_v12 }
  0xa4   : > { %1325 = vmatprep.subr.mxu0 %v1637_v0  ;;  %1352 = vmatprep.subr.mxu1 %v1637_v0 }
  0xa5   : > { %1326 = vmatpush3.msra.mxu0 %v421_v19  ;;  %1353 = vmatpush3.msra.mxu1 %v1823_v17  ;;  %v253_v17 = vlaneseq }
  0xa6   : > { %1327 = vmatprep.subr.mxu0 %v1637_v0  ;;  %1354 = vmatprep.subr.mxu1 %v1637_v0 }
  0xa7   : > { %1328 = vmatpush3.msra.mxu0 %v428_v37  ;;  %1355 = vmatpush3.msra.mxu1 %v1839_v25  ;;  %v254_v18 = vshrl.u32 %v253_v17, 7 }
  0xa8   : > { %1329 = vmatprep.subr.mxu0 %v1637_v0  ;;  %1356 = vmatprep.subr.mxu1 %v1637_v0 }
  0xa9   : > { %1330 = vmatpush3.msra.mxu0 %v435_v44  ;;  %1357 = vmatpush3.msra.mxu1 %v1843_v28  ;;  %v255_v20 = vsub.s32 0, %v254_v18  ;;  %v928_v19 = vsub.s32 2, %v254_v18 }
  0xaa   : > { %1331 = vmatprep.subr.mxu0 %v1637_v0  ;;  %1358 = vmatprep.subr.mxu1 %v1637_v0 }
  0xab   : > { %1332 = vmatpush3.msra.mxu0 %v442_v54  ;;  %1359 = vmatpush3.msra.mxu1 %v1863_v35  ;;  %v256_v22 = vrot.slane %v252_v21, %v255_v20  ;;  %v929_v31 = vrot.slane %v252_v21, %v928_v19 }
  0xac   : > { %1333 = vmatprep.subr.mxu0 %v1637_v0  ;;  %1360 = vmatprep.subr.mxu1 %v1637_v0 }
  0xad   : > { %1334 = vmatpush3.msra.mxu0 %v449_v2  ;;  %1361 = vmatpush3.msra.mxu1 %v1878_v45  ;;  %v904_v45 = vand.u32 127, %v253_v17 }
  0xae   : > { %1335 = vmatprep.subr.mxu0 %v1637_v0  ;;  %1362 = vmatprep.subr.mxu1 %v1637_v0 }
  0xaf   : > { %1336 = vmatpush3.msra.mxu0 %v456_v14  ;;  %1337 = vmatprep.mubr.msk.f32.mxu0 %vm1638_vm0, %v1637_v0  ;;  %vm905_vm1 = vcmp.lt.s32.totalorder %v904_v45, 32 }
  0xb0   : > { %1363 = vmatpush3.msra.mxu1 %v1886_v48  ;;  %1338 = vmatmul.mubr.f32.vlgmr.msra.gmra.mxu0 %v1912_v62 }
  0xb1   : > { %1364 = vmatprep.subr.mxu1 %v1637_v0  ;;  %1372 = vmatprep.mubr.msk.f32.mxu1 %vm1638_vm0, %v1637_v0 }
  0xb2   : > { %1365 = vmatpush3.msra.mxu1 %v1906_v59 }
  0xb3   : > { %1366 = vmatprep.subr.mxu1 %v1637_v0 }
  0xb4   : > { %1367 = vmatpush3.msra.mxu1 %v1916_v63 }
  0xb5   : > { %1368 = vmatprep.subr.mxu1 %v1637_v0 }
  0xb6   : > { %1369 = vmatpush3.msra.mxu1 %v1931_v13  ;;  %v923_v13 = vsub.s32 1, %v254_v18 }
  0xb7   : > { %1370 = vmatprep.subr.mxu1 %v1637_v0 }
  0xb8   : > { %1371 = vmatpush3.msra.mxu1 %v1944_v32  ;;  %v924_v26 = vrot.slane %v252_v21, %v923_v13 }
  0xb9   : > { %1373 = vmatmul.mubr.f32.vlgmr.msra.gmra.mxu1 %v1912_v62 }
 0x12e   : > { %v344_v4 = vpop.f32.mrf.mxu0 }
 0x12f   : > { %v345_v23 = vadd.f32 %v344_v4, %v256_v22 }
 0x130   : > { %v1199_v5 = vpop.f32.mrf.mxu0 }
 0x135   : > { %v495_v6 = vpop.f32.mrf.mxu1 }
 0x136   : > { %v496_v0 = vadd.f32 %v495_v6, %v345_v23 }
 0x137   : > { %v1234_v10 = vpop.f32.mrf.mxu1 }
 0x14e   : > { %v599_v11 = vpop.f32.mrf.mxu0 }
 0x14f   : > { %v600_v27 = vadd.f32 %v599_v11, %v496_v0 }
 0x150   : > { %v1269_v12 = vpop.f32.mrf.mxu0 }
 0x157   : > { %v688_v15 = vpop.f32.mrf.mxu1 }
 0x158   : > { %v689_v28 = vadd.f32 %v688_v15, %v600_v27 }
 0x159   : > { %v1304_v16 = vpop.f32.mrf.mxu1 }
 0x170   : > { %v807_v24 = vpop.f32.mrf.mxu0 }
 0x171   : > { %v808_v29 = vadd.f32 %v807_v24, %v689_v28 }
 0x172   : > { %v1339_v25 = vpop.f32.mrf.mxu0 }
 0x179   : > { %v894_v30 = vpop.f32.mrf.mxu1 }
 0x17a   : > { %v895_v34 = vadd.f32 %v894_v30, %v808_v29 }
 0x17b   : > { %v1374_v35 = vpop.f32.mrf.mxu1 }
 0x17c   : > { %v898_v40 = vmul.f32 0.5, %v895_v34 }
 0x17e   : > { %1462 = vtanh.f32 %v898_v40 }
 0x18b   : > { %v1463_v43 = vpop.eup %1462 }
 0x18c   : > { %v900_v46 = vmul.f32 0.5, %v1463_v43 }
 0x18e   : > { %v901_v47 = vadd.f32 0.5, %v900_v46 }
 0x190   : > { %v902_v48 = vadd.f32 %v901_v47, %v1889_v50 }
 0x192   : > { %v908_v53 = vsel %vm905_vm1, %v902_v48, 0.0 }
 0x193   : > { %909 = vadd.xlane.f32.xlu0 %v908_v53 }
 0x21c   : > { %v910_v55 = vpop.xlane.xlu0 %909 }
 0x21d   : > { %v911_v57 = vmul.f32 0.03125, %v910_v55 }
 0x21f   : > { %v912_v59 = vsub.f32 %v902_v48, %v911_v57 }
 0x221   : > { %v913_v61 = vsel %vm905_vm1, %v912_v59, 0.0 }
 0x222   : > { %v914_v62 = vmul.f32 %v913_v61, %v913_v61 }
 0x224   : > { %915 = vadd.xlane.f32.xlu0 %v914_v62 }
 0x2ad   : > { %v916_v63 = vpop.xlane.xlu0 %915 }
 0x2ae   : > { %v917_v3 = vmul.f32 0.03125, %v916_v63 }
 0x2b0   : > { %v918_v8 = vadd.f32 1e-05, %v917_v3 }
 0x2b2   : > { %1464 = vrsqrt.f32 %v918_v8 }
 0x2bf   : > { %v1465_v50 = vpop.eup %1464 }
 0x2c0   : > { %v920_v32 = vmul.f32 %v1465_v50, %v912_v59 }
 0x2c2   : > { %v925_v37 = vmul.f32 %v924_v26, %v920_v32 }
 0x2c4   : > { %v930_v38 = vadd.f32 %v929_v31, %v925_v37 }
 0x2c6   : > { %931 = vst [vmem:[%s234_s22] sm:$0xff] %v930_v38 }
 0x2c7   : > { %1559 = shalt.err (!%p1556_p5)
}
 0x2c8   : > { %s1560_s10 = scalar_lea.hbm %s944_s6, 128  ;;  %s1564_s26 = scalar_lea.hbm %s2212_s3, 256 }
 0x2c9   : > { %p1561_p10 = scmp.ne.s32.totalorder %s944_s6, %s1560_s10  ;;  %p1565_p6 = scmp.lt.s32.totalorder %s944_s6, %s2212_s3 }
 0x2ca   : > { %p1566_p12 = scmp.lt.s32.totalorder %s1564_s26, %s1560_s10 }
 0x2cb   : > { %p1562_p1 = pnand %p1561_p10, %p1755_p7 }
 0x2cc   : > { %p1567_p3 = por %p1566_p12, %p1565_p6 }
 0x2cd   : > { %p1563_p4 = pneg %p1562_p1 }
 0x2cf   : > { %p1568_p8 = pnand %p1567_p3, %p1563_p4 }
 0x2d1   : > { %1571 = shalt.err (!%p1568_p8)
}
 0x2d2   : > { %1385 = dma.vmem_to_hbm [thread:$0]  (%p1755_p7), %s947_s24, 128, %s944_s6, %s933_s7  }
 0x2d3 PF: > { %s958_s30 = sand.u32 1, %s1610_s12   ;;  %p2226_p9 = scmp.ne.s32.totalorder %s2219_s23, 0 }
 0x2d4   : > { %p2227_p11 = scmp.ge.s32.totalorder %s1630_s17, 2  ;;  %s959_s20 = scalar_lea.sflag [#allocation4], %s958_s30 }
 0x2d6   : > { %p1399_p2 = pnand %p2227_p11, %p2226_p9 }
 0x2d8   : > { %p1400_p13 = pneg %p1399_p2 }
 0x2da   : > { %1605 = dma.done.wait (%p1400_p13), %s959_s20, 128  }
 0x2db   : > { %1607 = vsyncadd (%p1400_p13), %s959_s20, 4294967168  ;;  %s20_s17 = sadd.s32 1, %s1630_s17   ;;  %s2228_s12 = smov %s1614_s13 }
 0x2dc   : > { %p17_p0 = scmp.ge.s32.totalorder %s20_s17, 4   ;;  %s2229_s13 = smov %s1618_s14 }
 0x2dd   : > { %s2230_s14 = smov %s1764_s29  ;;  %s2231_s15 = smov %s1626_s16 }
 0x2de   : > { %s2232_s16 = smov %s2234_s11  ;;  %19 = sbr.rel (!%p17_p0) target bundleno = 7 (0x7), region = 86 }
 0x2e3   :  { %964 = vsyncpa [#allocation3], 1 }
 0x2e4   :  { %966 = vsyncpa [#allocation3 + $0x1], 1 }
 0x2e5   :  { %967 = vsyncpa [#allocation6], 1 }
 0x2e6   :  { %968 = vsyncpa [#allocation4], 1 }
 0x2e7   :  { %970 = vsyncpa [#allocation4 + $0x1], 1 }

</bundles_post_ra>
